<compile_context>
chip_gen: v6e
topology: v6e:2x2x1
jax: 0.10.0
libtpu: 0.0.40
codegen_flags: <defaults>
</compile_context>

<pallas_src>
import functools

import jax
import jax.numpy as jnp
from jax import lax
from jax.experimental import pallas as pl
from jax.experimental.pallas import tpu as pltpu


# ----------------------------- Pallas kernel ------------------------------ #
def _fused_supernet_kernel(x_ref, w1_ref, b1_ref, mask_ref, w2_ref, b2_ref,
                           o_ref, col1_ref, col2_ref,
                           *, offs1, offs2, mv1, mv2, cp, cm):
    """conv1 (gs-combined SuperModule) + bias + ReLU + mask, then conv2 + bias.

    Both convs run on a zero-padded, per-image-flattened "extended" pixel grid of
    row stride Wp: a conv tap (di, dj) is the lane slice shifted by di*Wp + dj.
    All taps are packed into a VMEM im2col scratch (8-row aligned slabs, lane-dense
    columns) so each conv is ONE (C_out, T*C_in) x (T*C_in, M) MXU GEMM.
    """
    x = x_ref[...]                                               # (Cp, LX)

    # im2col for conv1: one statically shifted lane slice per tap.
    for t, off in enumerate(offs1):
        col1_ref[t * cp:(t + 1) * cp, :] = x[:, off:off + mv1]

    # SuperModule (all branches + gumbel weights folded) as ONE GEMM + bias + ReLU,
    # then zero the pixels computed at padded / cross-image centres; this also
    # serves as the zero padding the tail 3x3 conv needs.
    y1 = jnp.maximum(
        jnp.dot(w1_ref[...], col1_ref[...], preferred_element_type=jnp.float32)
        + b1_ref[...], 0.0) * mask_ref[...]                      # (Cm, mv1)

    # im2col for conv2 straight from the in-register y1 (never leaves VMEM/vregs).
    for t, off in enumerate(offs2):
        col2_ref[t * cm:(t + 1) * cm, :] = y1[:, off:off + mv2]

    # Seed tail conv (3x3) as ONE GEMM + bias, written lane-dense to the output.
    o_ref[...] = (jnp.dot(w2_ref[...], col2_ref[...],
                          preferred_element_type=jnp.float32)
                  + b2_ref[...]).astype(o_ref.dtype)


# ------------------------------ JAX glue ---------------------------------- #
def _round_up(v, m):
    return ((v + m - 1) // m) * m


def _combine_branch_weights(branch_w, branch_b, gs):
    """Fold gumbel-softmax branch weights into one conv kernel (exact)."""
    kmax = max(w.shape[-1] for w in branch_w)
    cmid, cin = branch_w[0].shape[:2]
    w_comb = jnp.zeros((cmid, cin, kmax, kmax), jnp.float32)
    b_comb = jnp.zeros((cmid,), jnp.float32)
    for i, (w, b) in enumerate(zip(branch_w, branch_b)):
        k = w.shape[-1]
        o = (kmax - k) // 2
        w_comb = w_comb.at[:, :, o:o + k, o:o + k].add(gs[i] * w)
        b_comb = b_comb + gs[i] * b
    return w_comb, b_comb


def _taps_to_gemm_weights(w, c_in_pad):
    """(Co, Ci, K, K) -> (Co, K*K*c_in_pad), column order = tap-major, chan-minor."""
    co, ci, k, _ = w.shape
    w = jnp.pad(w, ((0, 0), (0, c_in_pad - ci), (0, 0), (0, 0)))
    w = w.transpose(2, 3, 0, 1).reshape(k * k, co, c_in_pad)
    return w.transpose(1, 0, 2).reshape(co, k * k * c_in_pad)


@jax.jit
def supernet_forward(x, branch_w, branch_b, gs_weights, conv2_w, conv2_b):
    """SuperNet.forward: conv1 = weighted branch sum, ReLU, conv2 — one kernel."""
    N, Cin, H, W = x.shape
    Cmid = branch_w[0].shape[0]
    Cout, _, K2, _ = conv2_w.shape

    # Collapse all branches into a single conv; gs folded into weights & bias.
    w1_comb, b1_comb = _combine_branch_weights(branch_w, branch_b, gs_weights)
    K1 = w1_comb.shape[-1]
    P1, P2 = K1 // 2, K2 // 2

    # Sublane-aligned channel counts (rows of the im2col slabs).
    Cp = _round_up(Cin, 8)
    Cm = _round_up(Cmid, 8)

    # Shared extended-grid geometry (images padded by P1, flattened row-major).
    Hp, Wp = H + 2 * P1, W + 2 * P1
    per_img = Hp * Wp
    OFF = P2 * Wp + P2                                   # leading zeros so conv2's
    MV2 = _round_up(N * per_img, 128)                    # backward taps read zeros
    MV1 = _round_up(MV2 + (K2 - 1) * (Wp + 1), 128)
    LX = _round_up(MV1 + (K1 - 1) * (Wp + 1), 128)

    # Input: NCHW -> channel-major padded flat layout (Cp, LX), zeros elsewhere.
    x_pad = jnp.pad(x, ((0, 0), (0, 0), (P1, P1), (P1, P1)))
    x_cf = x_pad.transpose(1, 0, 2, 3).reshape(Cin, N * per_img)
    x_flat = jnp.pad(x_cf, ((0, Cp - Cin), (OFF, LX - OFF - N * per_img)))

    # Valid-pixel mask on the extended grid: zeroes conv1 outputs computed at
    # padded / cross-image centres (doubles as conv2's zero padding).
    valid = jnp.pad(jnp.ones((N, H, W), jnp.float32),
                    ((0, 0), (0, Hp - H), (0, Wp - W)))
    mask = jnp.pad(valid.reshape(-1), (OFF, MV1 - OFF - N * per_img)).reshape(1, MV1)

    # GEMM weights; tap t = di*K + dj  <->  lane offset di*Wp + dj.
    w1_pad = jnp.pad(w1_comb, ((0, Cm - Cmid), (0, 0), (0, 0), (0, 0)))
    w1_flat = _taps_to_gemm_weights(w1_pad, Cp)          # (Cm,   K1*K1*Cp)
    w2_flat = _taps_to_gemm_weights(conv2_w, Cm)         # (Cout, K2*K2*Cm)
    b1 = jnp.pad(b1_comb, (0, Cm - Cmid)).reshape(Cm, 1)
    b2 = conv2_b.reshape(Cout, 1)

    offs1 = tuple(di * Wp + dj for di in range(K1) for dj in range(K1))
    offs2 = tuple(di * Wp + dj for di in range(K2) for dj in range(K2))

    kernel = functools.partial(_fused_supernet_kernel, offs1=offs1, offs2=offs2,
                               mv1=MV1, mv2=MV2, cp=Cp, cm=Cm)
    y2_ext = pl.pallas_call(
        kernel,
        out_shape=jax.ShapeDtypeStruct((Cout, MV2), jnp.float32),
        in_specs=[pl.BlockSpec(memory_space=pltpu.MemorySpace.VMEM)] * 6,
        out_specs=pl.BlockSpec(memory_space=pltpu.MemorySpace.VMEM),
        scratch_shapes=[pltpu.VMEM((len(offs1) * Cp, MV1), jnp.float32),
                        pltpu.VMEM((len(offs2) * Cm, MV2), jnp.float32)],
    )(x_flat, w1_flat, b1, mask, w2_flat, b2)

    # Lane-dense (Cout, MV2) -> NCHW: keep only the valid pixels of the grid.
    y2 = y2_ext[:, :N * per_img].reshape(Cout, N, Hp, Wp)
    return y2[:, :, :H, :W].transpose(1, 0, 2, 3)


# ------------------------- Reference (pure JAX) ---------------------------- #
def conv_ref(x, w, b, pad):
    y = lax.conv_general_dilated(
        x, w, window_strides=(1, 1), padding=[(pad, pad), (pad, pad)],
        dimension_numbers=("NCHW", "OIHW", "NCHW"))
    return y + b.reshape(1, -1, 1, 1)


if __name__ == "__main__":
    N, Cin, H, W = 2, 4, 16, 16
    Cmid, Cout = 8, 4
    ksizes = (1, 3, 5)

    key = jax.random.PRNGKey(0)
    keys = jax.random.split(key, 4 + 2 * len(ksizes))
    k_x, k_gumbel, k_c2w, k_c2b = keys[:4]
    k_params = keys[4:]

    x = jax.random.normal(k_x, (N, Cin, H, W), jnp.float32)

    # SuperModule alternative conv weights (PyTorch OIHW layout), deterministic init.
    branch_w, branch_b = [], []
    for i, k in enumerate(ksizes):
        fan_in = Cin * k * k
        bound = 1.0 / float(fan_in) ** 0.5
        branch_w.append(jax.random.uniform(k_params[2 * i], (Cmid, Cin, k, k),
                                           jnp.float32, -bound, bound))
        branch_b.append(jax.random.uniform(k_params[2 * i + 1], (Cmid,),
                                           jnp.float32, -bound, bound))

    # Seed tail conv (8 -> 4, 3x3, pad 1).
    bound2 = 1.0 / float(Cmid * 3 * 3) ** 0.5
    conv2_w = jax.random.uniform(k_c2w, (Cout, Cmid, 3, 3), jnp.float32, -bound2, bound2)
    conv2_b = jax.random.uniform(k_c2b, (Cout,), jnp.float32, -bound2, bound2)

    # Architecture weights initialised to 1/len(alternatives) (SuperModule.__init__),
    # then F.gumbel_softmax(weights, tau=1.0, hard=False).
    arch_logits = jnp.full((len(ksizes),), 1.0 / len(ksizes), jnp.float32)
    gumbel_noise = jax.random.gumbel(k_gumbel, arch_logits.shape, jnp.float32)
    gs_weights = jax.nn.softmax((arch_logits + gumbel_noise) / 1.0)
    # TODO(synk): params/FLOPs cost bookkeeping, export(), get_supermodules_weights()
    # and _check_sanity tracing are host-side NAS utilities with no kernel
    # equivalent; only forward() is implemented here.

    out = supernet_forward(x, branch_w, branch_b, gs_weights, conv2_w, conv2_b)
    out = jax.block_until_ready(out)

    # Pure-JAX reference for correctness.
    ref1 = sum(gs_weights[i] * conv_ref(x, branch_w[i], branch_b[i], ksizes[i] // 2)
               for i in range(len(ksizes)))
    ref1 = jnp.maximum(ref1, 0.0)
    ref = conv_ref(ref1, conv2_w, conv2_b, 1)

    assert out.shape == (N, Cout, H, W), out.shape
    err = float(jnp.max(jnp.abs(out - ref)))
    assert jnp.allclose(out, ref, atol=2e-4, rtol=2e-4), err
    print("KERNEL_OK")
</pallas_src>

<mosaic_0001>
module attributes {stable_mosaic.version = 11 : i64} {
  func.func @_fused_supernet_kernel(%arg0: memref<8x1152xf32, #tpu.memory_space<vmem>>, %arg1: memref<8x200xf32, #tpu.memory_space<vmem>>, %arg2: memref<8x1xf32, #tpu.memory_space<vmem>>, %arg3: memref<1x1024xf32, #tpu.memory_space<vmem>>, %arg4: memref<4x72xf32, #tpu.memory_space<vmem>>, %arg5: memref<4x1xf32, #tpu.memory_space<vmem>>, %arg6: memref<4x896xf32, #tpu.memory_space<vmem>>, %arg7: memref<200x1024xf32, #tpu.memory_space<vmem>>, %arg8: memref<72x896xf32, #tpu.memory_space<vmem>>) attributes {dimension_semantics = [], scalar_prefetch = 0 : i64, scratch_operands = 2 : i64, tpu.core_type = #tpu.core_type<tc>} {
    %c0 = arith.constant 0 : index
    %c0_0 = arith.constant 0 : index
    %0 = vector.load %arg0[%c0, %c0_0] : memref<8x1152xf32, #tpu.memory_space<vmem>>, vector<8x1152xf32>
    %1 = vector.extract_strided_slice %0 {offsets = [0, 0], sizes = [8, 1024], strides = [1, 1]} : vector<8x1152xf32> to vector<8x1024xf32>
    %c0_1 = arith.constant 0 : index
    %c0_2 = arith.constant 0 : index
    %2 = vector.load %arg7[%c0_1, %c0_2] : memref<200x1024xf32, #tpu.memory_space<vmem>>, vector<8x1024xf32>
    tpu.vector_store %arg7[%c0_1, %c0_2], %1 {strides = array<i32>} : memref<200x1024xf32, #tpu.memory_space<vmem>>, vector<8x1024xf32>,
    %3 = vector.extract_strided_slice %0 {offsets = [0, 1], sizes = [8, 1024], strides = [1, 1]} : vector<8x1152xf32> to vector<8x1024xf32>
    %c8 = arith.constant 8 : index
    %c0_3 = arith.constant 0 : index
    %4 = vector.load %arg7[%c8, %c0_3] : memref<200x1024xf32, #tpu.memory_space<vmem>>, vector<8x1024xf32>
    tpu.vector_store %arg7[%c8, %c0_3], %3 {strides = array<i32>} : memref<200x1024xf32, #tpu.memory_space<vmem>>, vector<8x1024xf32>,
    %5 = vector.extract_strided_slice %0 {offsets = [0, 2], sizes = [8, 1024], strides = [1, 1]} : vector<8x1152xf32> to vector<8x1024xf32>
    %c16 = arith.constant 16 : index
    %c0_4 = arith.constant 0 : index
    %6 = vector.load %arg7[%c16, %c0_4] : memref<200x1024xf32, #tpu.memory_space<vmem>>, vector<8x1024xf32>
    tpu.vector_store %arg7[%c16, %c0_4], %5 {strides = array<i32>} : memref<200x1024xf32, #tpu.memory_space<vmem>>, vector<8x1024xf32>,
    %7 = vector.extract_strided_slice %0 {offsets = [0, 3], sizes = [8, 1024], strides = [1, 1]} : vector<8x1152xf32> to vector<8x1024xf32>
    %c24 = arith.constant 24 : index
    %c0_5 = arith.constant 0 : index
    %8 = vector.load %arg7[%c24, %c0_5] : memref<200x1024xf32, #tpu.memory_space<vmem>>, vector<8x1024xf32>
    tpu.vector_store %arg7[%c24, %c0_5], %7 {strides = array<i32>} : memref<200x1024xf32, #tpu.memory_space<vmem>>, vector<8x1024xf32>,
    %9 = vector.extract_strided_slice %0 {offsets = [0, 4], sizes = [8, 1024], strides = [1, 1]} : vector<8x1152xf32> to vector<8x1024xf32>
    %c32 = arith.constant 32 : index
    %c0_6 = arith.constant 0 : index
    %10 = vector.load %arg7[%c32, %c0_6] : memref<200x1024xf32, #tpu.memory_space<vmem>>, vector<8x1024xf32>
    tpu.vector_store %arg7[%c32, %c0_6], %9 {strides = array<i32>} : memref<200x1024xf32, #tpu.memory_space<vmem>>, vector<8x1024xf32>,
    %11 = vector.extract_strided_slice %0 {offsets = [0, 20], sizes = [8, 1024], strides = [1, 1]} : vector<8x1152xf32> to vector<8x1024xf32>
    %c40 = arith.constant 40 : index
    %c0_7 = arith.constant 0 : index
    %12 = vector.load %arg7[%c40, %c0_7] : memref<200x1024xf32, #tpu.memory_space<vmem>>, vector<8x1024xf32>
    tpu.vector_store %arg7[%c40, %c0_7], %11 {strides = array<i32>} : memref<200x1024xf32, #tpu.memory_space<vmem>>, vector<8x1024xf32>,
    %13 = vector.extract_strided_slice %0 {offsets = [0, 21], sizes = [8, 1024], strides = [1, 1]} : vector<8x1152xf32> to vector<8x1024xf32>
    %c48 = arith.constant 48 : index
    %c0_8 = arith.constant 0 : index
    %14 = vector.load %arg7[%c48, %c0_8] : memref<200x1024xf32, #tpu.memory_space<vmem>>, vector<8x1024xf32>
    tpu.vector_store %arg7[%c48, %c0_8], %13 {strides = array<i32>} : memref<200x1024xf32, #tpu.memory_space<vmem>>, vector<8x1024xf32>,
    %15 = vector.extract_strided_slice %0 {offsets = [0, 22], sizes = [8, 1024], strides = [1, 1]} : vector<8x1152xf32> to vector<8x1024xf32>
    %c56 = arith.constant 56 : index
    %c0_9 = arith.constant 0 : index
    %16 = vector.load %arg7[%c56, %c0_9] : memref<200x1024xf32, #tpu.memory_space<vmem>>, vector<8x1024xf32>
    tpu.vector_store %arg7[%c56, %c0_9], %15 {strides = array<i32>} : memref<200x1024xf32, #tpu.memory_space<vmem>>, vector<8x1024xf32>,
    %17 = vector.extract_strided_slice %0 {offsets = [0, 23], sizes = [8, 1024], strides = [1, 1]} : vector<8x1152xf32> to vector<8x1024xf32>
    %c64 = arith.constant 64 : index
    %c0_10 = arith.constant 0 : index
    %18 = vector.load %arg7[%c64, %c0_10] : memref<200x1024xf32, #tpu.memory_space<vmem>>, vector<8x1024xf32>
    tpu.vector_store %arg7[%c64, %c0_10], %17 {strides = array<i32>} : memref<200x1024xf32, #tpu.memory_space<vmem>>, vector<8x1024xf32>,
    %19 = vector.extract_strided_slice %0 {offsets = [0, 24], sizes = [8, 1024], strides = [1, 1]} : vector<8x1152xf32> to vector<8x1024xf32>
    %c72 = arith.constant 72 : index
    %c0_11 = arith.constant 0 : index
    %20 = vector.load %arg7[%c72, %c0_11] : memref<200x1024xf32, #tpu.memory_space<vmem>>, vector<8x1024xf32>
    tpu.vector_store %arg7[%c72, %c0_11], %19 {strides = array<i32>} : memref<200x1024xf32, #tpu.memory_space<vmem>>, vector<8x1024xf32>,
    %21 = vector.extract_strided_slice %0 {offsets = [0, 40], sizes = [8, 1024], strides = [1, 1]} : vector<8x1152xf32> to vector<8x1024xf32>
    %c80 = arith.constant 80 : index
    %c0_12 = arith.constant 0 : index
    %22 = vector.load %arg7[%c80, %c0_12] : memref<200x1024xf32, #tpu.memory_space<vmem>>, vector<8x1024xf32>
    tpu.vector_store %arg7[%c80, %c0_12], %21 {strides = array<i32>} : memref<200x1024xf32, #tpu.memory_space<vmem>>, vector<8x1024xf32>,
    %23 = vector.extract_strided_slice %0 {offsets = [0, 41], sizes = [8, 1024], strides = [1, 1]} : vector<8x1152xf32> to vector<8x1024xf32>
    %c88 = arith.constant 88 : index
    %c0_13 = arith.constant 0 : index
    %24 = vector.load %arg7[%c88, %c0_13] : memref<200x1024xf32, #tpu.memory_space<vmem>>, vector<8x1024xf32>
    tpu.vector_store %arg7[%c88, %c0_13], %23 {strides = array<i32>} : memref<200x1024xf32, #tpu.memory_space<vmem>>, vector<8x1024xf32>,
    %25 = vector.extract_strided_slice %0 {offsets = [0, 42], sizes = [8, 1024], strides = [1, 1]} : vector<8x1152xf32> to vector<8x1024xf32>
    %c96 = arith.constant 96 : index
    %c0_14 = arith.constant 0 : index
    %26 = vector.load %arg7[%c96, %c0_14] : memref<200x1024xf32, #tpu.memory_space<vmem>>, vector<8x1024xf32>
    tpu.vector_store %arg7[%c96, %c0_14], %25 {strides = array<i32>} : memref<200x1024xf32, #tpu.memory_space<vmem>>, vector<8x1024xf32>,
    %27 = vector.extract_strided_slice %0 {offsets = [0, 43], sizes = [8, 1024], strides = [1, 1]} : vector<8x1152xf32> to vector<8x1024xf32>
    %c104 = arith.constant 104 : index
    %c0_15 = arith.constant 0 : index
    %28 = vector.load %arg7[%c104, %c0_15] : memref<200x1024xf32, #tpu.memory_space<vmem>>, vector<8x1024xf32>
    tpu.vector_store %arg7[%c104, %c0_15], %27 {strides = array<i32>} : memref<200x1024xf32, #tpu.memory_space<vmem>>, vector<8x1024xf32>,
    %29 = vector.extract_strided_slice %0 {offsets = [0, 44], sizes = [8, 1024], strides = [1, 1]} : vector<8x1152xf32> to vector<8x1024xf32>
    %c112 = arith.constant 112 : index
    %c0_16 = arith.constant 0 : index
    %30 = vector.load %arg7[%c112, %c0_16] : memref<200x1024xf32, #tpu.memory_space<vmem>>, vector<8x1024xf32>
    tpu.vector_store %arg7[%c112, %c0_16], %29 {strides = array<i32>} : memref<200x1024xf32, #tpu.memory_space<vmem>>, vector<8x1024xf32>,
    %31 = vector.extract_strided_slice %0 {offsets = [0, 60], sizes = [8, 1024], strides = [1, 1]} : vector<8x1152xf32> to vector<8x1024xf32>
    %c120 = arith.constant 120 : index
    %c0_17 = arith.constant 0 : index
    %32 = vector.load %arg7[%c120, %c0_17] : memref<200x1024xf32, #tpu.memory_space<vmem>>, vector<8x1024xf32>
    tpu.vector_store %arg7[%c120, %c0_17], %31 {strides = array<i32>} : memref<200x1024xf32, #tpu.memory_space<vmem>>, vector<8x1024xf32>,
    %33 = vector.extract_strided_slice %0 {offsets = [0, 61], sizes = [8, 1024], strides = [1, 1]} : vector<8x1152xf32> to vector<8x1024xf32>
    %c128 = arith.constant 128 : index
    %c0_18 = arith.constant 0 : index
    %34 = vector.load %arg7[%c128, %c0_18] : memref<200x1024xf32, #tpu.memory_space<vmem>>, vector<8x1024xf32>
    tpu.vector_store %arg7[%c128, %c0_18], %33 {strides = array<i32>} : memref<200x1024xf32, #tpu.memory_space<vmem>>, vector<8x1024xf32>,
    %35 = vector.extract_strided_slice %0 {offsets = [0, 62], sizes = [8, 1024], strides = [1, 1]} : vector<8x1152xf32> to vector<8x1024xf32>
    %c136 = arith.constant 136 : index
    %c0_19 = arith.constant 0 : index
    %36 = vector.load %arg7[%c136, %c0_19] : memref<200x1024xf32, #tpu.memory_space<vmem>>, vector<8x1024xf32>
    tpu.vector_store %arg7[%c136, %c0_19], %35 {strides = array<i32>} : memref<200x1024xf32, #tpu.memory_space<vmem>>, vector<8x1024xf32>,
    %37 = vector.extract_strided_slice %0 {offsets = [0, 63], sizes = [8, 1024], strides = [1, 1]} : vector<8x1152xf32> to vector<8x1024xf32>
    %c144 = arith.constant 144 : index
    %c0_20 = arith.constant 0 : index
    %38 = vector.load %arg7[%c144, %c0_20] : memref<200x1024xf32, #tpu.memory_space<vmem>>, vector<8x1024xf32>
    tpu.vector_store %arg7[%c144, %c0_20], %37 {strides = array<i32>} : memref<200x1024xf32, #tpu.memory_space<vmem>>, vector<8x1024xf32>,
    %39 = vector.extract_strided_slice %0 {offsets = [0, 64], sizes = [8, 1024], strides = [1, 1]} : vector<8x1152xf32> to vector<8x1024xf32>
    %c152 = arith.constant 152 : index
    %c0_21 = arith.constant 0 : index
    %40 = vector.load %arg7[%c152, %c0_21] : memref<200x1024xf32, #tpu.memory_space<vmem>>, vector<8x1024xf32>
    tpu.vector_store %arg7[%c152, %c0_21], %39 {strides = array<i32>} : memref<200x1024xf32, #tpu.memory_space<vmem>>, vector<8x1024xf32>,
    %41 = vector.extract_strided_slice %0 {offsets = [0, 80], sizes = [8, 1024], strides = [1, 1]} : vector<8x1152xf32> to vector<8x1024xf32>
    %c160 = arith.constant 160 : index
    %c0_22 = arith.constant 0 : index
    %42 = vector.load %arg7[%c160, %c0_22] : memref<200x1024xf32, #tpu.memory_space<vmem>>, vector<8x1024xf32>
    tpu.vector_store %arg7[%c160, %c0_22], %41 {strides = array<i32>} : memref<200x1024xf32, #tpu.memory_space<vmem>>, vector<8x1024xf32>,
    %43 = vector.extract_strided_slice %0 {offsets = [0, 81], sizes = [8, 1024], strides = [1, 1]} : vector<8x1152xf32> to vector<8x1024xf32>
    %c168 = arith.constant 168 : index
    %c0_23 = arith.constant 0 : index
    %44 = vector.load %arg7[%c168, %c0_23] : memref<200x1024xf32, #tpu.memory_space<vmem>>, vector<8x1024xf32>
    tpu.vector_store %arg7[%c168, %c0_23], %43 {strides = array<i32>} : memref<200x1024xf32, #tpu.memory_space<vmem>>, vector<8x1024xf32>,
    %45 = vector.extract_strided_slice %0 {offsets = [0, 82], sizes = [8, 1024], strides = [1, 1]} : vector<8x1152xf32> to vector<8x1024xf32>
    %c176 = arith.constant 176 : index
    %c0_24 = arith.constant 0 : index
    %46 = vector.load %arg7[%c176, %c0_24] : memref<200x1024xf32, #tpu.memory_space<vmem>>, vector<8x1024xf32>
    tpu.vector_store %arg7[%c176, %c0_24], %45 {strides = array<i32>} : memref<200x1024xf32, #tpu.memory_space<vmem>>, vector<8x1024xf32>,
    %47 = vector.extract_strided_slice %0 {offsets = [0, 83], sizes = [8, 1024], strides = [1, 1]} : vector<8x1152xf32> to vector<8x1024xf32>
    %c184 = arith.constant 184 : index
    %c0_25 = arith.constant 0 : index
    %48 = vector.load %arg7[%c184, %c0_25] : memref<200x1024xf32, #tpu.memory_space<vmem>>, vector<8x1024xf32>
    tpu.vector_store %arg7[%c184, %c0_25], %47 {strides = array<i32>} : memref<200x1024xf32, #tpu.memory_space<vmem>>, vector<8x1024xf32>,
    %49 = vector.extract_strided_slice %0 {offsets = [0, 84], sizes = [8, 1024], strides = [1, 1]} : vector<8x1152xf32> to vector<8x1024xf32>
    %c192 = arith.constant 192 : index
    %c0_26 = arith.constant 0 : index
    %50 = vector.load %arg7[%c192, %c0_26] : memref<200x1024xf32, #tpu.memory_space<vmem>>, vector<8x1024xf32>
    tpu.vector_store %arg7[%c192, %c0_26], %49 {strides = array<i32>} : memref<200x1024xf32, #tpu.memory_space<vmem>>, vector<8x1024xf32>,
    %c0_27 = arith.constant 0 : index
    %c0_28 = arith.constant 0 : index
    %51 = vector.load %arg1[%c0_27, %c0_28] : memref<8x200xf32, #tpu.memory_space<vmem>>, vector<8x200xf32>
    %c0_29 = arith.constant 0 : index
    %c0_30 = arith.constant 0 : index
    %52 = vector.load %arg7[%c0_29, %c0_30] : memref<200x1024xf32, #tpu.memory_space<vmem>>, vector<200x1024xf32>
    %cst = arith.constant dense<0.000000e+00> : vector<8x1024xf32>
    %53 = tpu.matmul %51, %52, %cst {dimension_numbers = #tpu.dot_dimension_numbers<[1], [0], [0], [1], [0, 0, 1, 1], [], []>} : vector<8x200xf32>, vector<200x1024xf32>, vector<8x1024xf32> -> vector<8x1024xf32>
    %c0_31 = arith.constant 0 : index
    %c0_32 = arith.constant 0 : index
    %54 = vector.load %arg2[%c0_31, %c0_32] : memref<8x1xf32, #tpu.memory_space<vmem>>, vector<8x1xf32>
    %55 = vector.broadcast %54 : vector<8x1xf32> to vector<8x1024xf32>
    %56 = arith.addf %53, %55 : vector<8x1024xf32>
    %cst_33 = arith.constant 0.000000e+00 : f32
    %57 = vector.broadcast %cst_33 : f32 to vector<8x1024xf32>
    %58 = arith.maximumf %56, %57 : vector<8x1024xf32>
    %c0_34 = arith.constant 0 : index
    %c0_35 = arith.constant 0 : index
    %59 = vector.load %arg3[%c0_34, %c0_35] : memref<1x1024xf32, #tpu.memory_space<vmem>>, vector<1x1024xf32>
    %60 = vector.broadcast %59 : vector<1x1024xf32> to vector<8x1024xf32>
    %61 = arith.mulf %58, %60 : vector<8x1024xf32>
    %62 = vector.extract_strided_slice %61 {offsets = [0, 0], sizes = [8, 896], strides = [1, 1]} : vector<8x1024xf32> to vector<8x896xf32>
    %c0_36 = arith.constant 0 : index
    %c0_37 = arith.constant 0 : index
    %63 = vector.load %arg8[%c0_36, %c0_37] : memref<72x896xf32, #tpu.memory_space<vmem>>, vector<8x896xf32>
    tpu.vector_store %arg8[%c0_36, %c0_37], %62 {strides = array<i32>} : memref<72x896xf32, #tpu.memory_space<vmem>>, vector<8x896xf32>,
    %64 = vector.extract_strided_slice %61 {offsets = [0, 1], sizes = [8, 896], strides = [1, 1]} : vector<8x1024xf32> to vector<8x896xf32>
    %c8_38 = arith.constant 8 : index
    %c0_39 = arith.constant 0 : index
    %65 = vector.load %arg8[%c8_38, %c0_39] : memref<72x896xf32, #tpu.memory_space<vmem>>, vector<8x896xf32>
    tpu.vector_store %arg8[%c8_38, %c0_39], %64 {strides = array<i32>} : memref<72x896xf32, #tpu.memory_space<vmem>>, vector<8x896xf32>,
    %66 = vector.extract_strided_slice %61 {offsets = [0, 2], sizes = [8, 896], strides = [1, 1]} : vector<8x1024xf32> to vector<8x896xf32>
    %c16_40 = arith.constant 16 : index
    %c0_41 = arith.constant 0 : index
    %67 = vector.load %arg8[%c16_40, %c0_41] : memref<72x896xf32, #tpu.memory_space<vmem>>, vector<8x896xf32>
    tpu.vector_store %arg8[%c16_40, %c0_41], %66 {strides = array<i32>} : memref<72x896xf32, #tpu.memory_space<vmem>>, vector<8x896xf32>,
    %68 = vector.extract_strided_slice %61 {offsets = [0, 20], sizes = [8, 896], strides = [1, 1]} : vector<8x1024xf32> to vector<8x896xf32>
    %c24_42 = arith.constant 24 : index
    %c0_43 = arith.constant 0 : index
    %69 = vector.load %arg8[%c24_42, %c0_43] : memref<72x896xf32, #tpu.memory_space<vmem>>, vector<8x896xf32>
    tpu.vector_store %arg8[%c24_42, %c0_43], %68 {strides = array<i32>} : memref<72x896xf32, #tpu.memory_space<vmem>>, vector<8x896xf32>,
    %70 = vector.extract_strided_slice %61 {offsets = [0, 21], sizes = [8, 896], strides = [1, 1]} : vector<8x1024xf32> to vector<8x896xf32>
    %c32_44 = arith.constant 32 : index
    %c0_45 = arith.constant 0 : index
    %71 = vector.load %arg8[%c32_44, %c0_45] : memref<72x896xf32, #tpu.memory_space<vmem>>, vector<8x896xf32>
    tpu.vector_store %arg8[%c32_44, %c0_45], %70 {strides = array<i32>} : memref<72x896xf32, #tpu.memory_space<vmem>>, vector<8x896xf32>,
    %72 = vector.extract_strided_slice %61 {offsets = [0, 22], sizes = [8, 896], strides = [1, 1]} : vector<8x1024xf32> to vector<8x896xf32>
    %c40_46 = arith.constant 40 : index
    %c0_47 = arith.constant 0 : index
    %73 = vector.load %arg8[%c40_46, %c0_47] : memref<72x896xf32, #tpu.memory_space<vmem>>, vector<8x896xf32>
    tpu.vector_store %arg8[%c40_46, %c0_47], %72 {strides = array<i32>} : memref<72x896xf32, #tpu.memory_space<vmem>>, vector<8x896xf32>,
    %74 = vector.extract_strided_slice %61 {offsets = [0, 40], sizes = [8, 896], strides = [1, 1]} : vector<8x1024xf32> to vector<8x896xf32>
    %c48_48 = arith.constant 48 : index
    %c0_49 = arith.constant 0 : index
    %75 = vector.load %arg8[%c48_48, %c0_49] : memref<72x896xf32, #tpu.memory_space<vmem>>, vector<8x896xf32>
    tpu.vector_store %arg8[%c48_48, %c0_49], %74 {strides = array<i32>} : memref<72x896xf32, #tpu.memory_space<vmem>>, vector<8x896xf32>,
    %76 = vector.extract_strided_slice %61 {offsets = [0, 41], sizes = [8, 896], strides = [1, 1]} : vector<8x1024xf32> to vector<8x896xf32>
    %c56_50 = arith.constant 56 : index
    %c0_51 = arith.constant 0 : index
    %77 = vector.load %arg8[%c56_50, %c0_51] : memref<72x896xf32, #tpu.memory_space<vmem>>, vector<8x896xf32>
    tpu.vector_store %arg8[%c56_50, %c0_51], %76 {strides = array<i32>} : memref<72x896xf32, #tpu.memory_space<vmem>>, vector<8x896xf32>,
    %78 = vector.extract_strided_slice %61 {offsets = [0, 42], sizes = [8, 896], strides = [1, 1]} : vector<8x1024xf32> to vector<8x896xf32>
    %c64_52 = arith.constant 64 : index
    %c0_53 = arith.constant 0 : index
    %79 = vector.load %arg8[%c64_52, %c0_53] : memref<72x896xf32, #tpu.memory_space<vmem>>, vector<8x896xf32>
    tpu.vector_store %arg8[%c64_52, %c0_53], %78 {strides = array<i32>} : memref<72x896xf32, #tpu.memory_space<vmem>>, vector<8x896xf32>,
    %c0_54 = arith.constant 0 : index
    %c0_55 = arith.constant 0 : index
    %80 = vector.load %arg4[%c0_54, %c0_55] : memref<4x72xf32, #tpu.memory_space<vmem>>, vector<4x72xf32>
    %c0_56 = arith.constant 0 : index
    %c0_57 = arith.constant 0 : index
    %81 = vector.load %arg8[%c0_56, %c0_57] : memref<72x896xf32, #tpu.memory_space<vmem>>, vector<72x896xf32>
    %cst_58 = arith.constant dense<0.000000e+00> : vector<4x896xf32>
    %82 = tpu.matmul %80, %81, %cst_58 {dimension_numbers = #tpu.dot_dimension_numbers<[1], [0], [0], [1], [0, 0, 1, 1], [], []>} : vector<4x72xf32>, vector<72x896xf32>, vector<4x896xf32> -> vector<4x896xf32>
    %c0_59 = arith.constant 0 : index
    %c0_60 = arith.constant 0 : index
    %83 = vector.load %arg5[%c0_59, %c0_60] : memref<4x1xf32, #tpu.memory_space<vmem>>, vector<4x1xf32>
    %84 = vector.broadcast %83 : vector<4x1xf32> to vector<4x896xf32>
    %85 = arith.addf %82, %84 : vector<4x896xf32>
    %c0_61 = arith.constant 0 : index
    %c0_62 = arith.constant 0 : index
    %86 = vector.load %arg6[%c0_61, %c0_62] : memref<4x896xf32, #tpu.memory_space<vmem>>, vector<4x896xf32>
    tpu.vector_store %arg6[%c0_61, %c0_62], %85 {strides = array<i32>} : memref<4x896xf32, #tpu.memory_space<vmem>>, vector<4x896xf32>,
    return
  }
}

</mosaic_0001>

<bundles_post_ra>
// kernel: supernet_forward.1
= control target key start
LH: loop header
LB: loop body
LE: loop exit
PB: predicated region body
PF: predicated region fallthrough
CT: control target
= control target key end

     0   :  { %s2391_s25 = smov 68   ;;  %s2392_s28 = smov 84   ;;  %vm669_vm0 = vcmask 556032   ;;  %vm626_vm1 = vcmask 687104   ;;  %vm583_vm2 = vcmask 695296   ;;  %vm540_vm3 = vcmask 703488   ;;  %s3750_s0 = inlined_call_operand.vmem [shape: f32[8,1152], index: 0, kind: input, shape index: {}]   ;;  %s3751_s1 = inlined_call_operand.vmem [shape: f32[8,200], index: 1, kind: input, shape index: {}]   ;;  %s3752_s2 = inlined_call_operand.vmem [shape: f32[8,1], index: 2, kind: input, shape index: {}]   ;;  %s3753_s3 = inlined_call_operand.vmem [shape: f32[1,1024], index: 3, kind: input, shape index: {}]   ;;  %s3754_s5 = inlined_call_operand.vmem [shape: f32[4,1], index: 5, kind: input, shape index: {}]   ;;  %s3755_s4 = inlined_call_operand.vmem [shape: f32[4,72], index: 4, kind: input, shape index: {}]   ;;  %s3756_s6 = inlined_call_operand.vmem [shape: f32[4,896], index: 6, kind: output, shape index: {}]  }
   0x1   :  { %v2456_v0 = vld [vmem:[%s3750_s0 + $0x8] sm:$0xff]  ;;  %v2461_v1 = vld [vmem:[%s3750_s0] sm:$0xff]  ;;  %v2470_v2 = vld [vmem:[%s3750_s0 + $0x10] sm:$0xff]  ;;  %s2393_s29 = smov 85   ;;  %s2394_s30 = smov 86   ;;  %vm497_vm4 = vcmask 711680  }
   0x2   :  { %653 = vrot.lane.b32.xlu0 %v2456_v0, %s2391_s25  ;;  %651 = vrot.lane.b32.xlu1 %v2461_v1, %s2391_s25  ;;  %s2395_s7 = smov 87   ;;  %s2396_s8 = smov 88   ;;  %v2515_v3 = vld [vmem:[%s3750_s0 + $0x18] sm:$0xff]  ;;  %v2524_v4 = vld [vmem:[%s3750_s0 + $0x20] sm:$0xff]  ;;  %vm454_vm5 = vcmask 719872   ;;  %vm3773_vm6 = vcmask 850944  }
   0x3   :  { %s2397_s9 = smov 104   ;;  %s2398_s10 = smov 105   ;;  %vm3765_vm7 = vcmask 859136   ;;  %vm3772_vm8 = vcmask 867328   ;;  %vm3766_vm9 = vcmask 875520   ;;  %vm3767_vm10 = vcmask 883712  }
   0x4   :  { %s2399_s15 = smov 106   ;;  %s2400_s16 = smov 107   ;;  %vm3768_vm11 = vcmask 1014784   ;;  %vm1289_vm12 = vcmask 588800   ;;  %vm3769_vm13 = vcmask 1022976   ;;  %vm3770_vm14 = vcmask 1031168  }
   0x5   :  { %s2401_s17 = smov 108   ;;  %s2402_s18 = smov 124   ;;  %vm3771_vm15 = vcmask 1039360  }
   0x6   :  { %655 = vrot.lane.b32.xlu0 %v2470_v2, %s2391_s25  ;;  %610 = vrot.lane.b32.xlu1 %v2456_v0, %s2392_s28  ;;  %s3763_s19 = smov 125   ;;  %s3759_s20 = smov 126  }
   0x7   :  { %s3757_s21 = smov 127   ;;  %s3761_s22 = smov 44  }
   0x8   :  { %s2407_s23 = smov 45   ;;  %s2408_s24 = smov 46  }
   0x9   :  { %s2409_s26 = smov 47   ;;  %s2410_s27 = smov 48  }
   0xa   :  { %612 = vrot.lane.b32.xlu0 %v2470_v2, %s2392_s28  ;;  %608 = vrot.lane.b32.xlu1 %v2461_v1, %s2392_s28  ;;  %s2411_s11 = smov 64   ;;  %s2412_s12 = smov 65  }
   0xb   :  { %s2413_s13 = smov 66  }
   0xe   :  { %567 = vrot.lane.b32.xlu0 %v2456_v0, %s2393_s29  ;;  %569 = vrot.lane.b32.xlu1 %v2470_v2, %s2393_s29 }
  0x12   :  { %565 = vrot.lane.b32.xlu0 %v2461_v1, %s2393_s29  ;;  %524 = vrot.lane.b32.xlu1 %v2456_v0, %s2394_s30 }
  0x16   :  { %526 = vrot.lane.b32.xlu0 %v2470_v2, %s2394_s30  ;;  %522 = vrot.lane.b32.xlu1 %v2461_v1, %s2394_s30 }
  0x1a   :  { %481 = vrot.lane.b32.xlu0 %v2456_v0, %s2395_s7  ;;  %483 = vrot.lane.b32.xlu1 %v2470_v2, %s2395_s7 }
  0x1e   :  { %479 = vrot.lane.b32.xlu0 %v2461_v1, %s2395_s7  ;;  %438 = vrot.lane.b32.xlu1 %v2456_v0, %s2396_s8 }
  0x22   :  { %440 = vrot.lane.b32.xlu0 %v2470_v2, %s2396_s8  ;;  %436 = vrot.lane.b32.xlu1 %v2461_v1, %s2396_s8 }
  0x26   :  { %395 = vrot.lane.b32.xlu0 %v2456_v0, %s2397_s9  ;;  %397 = vrot.lane.b32.xlu1 %v2470_v2, %s2397_s9 }
  0x2a   :  { %393 = vrot.lane.b32.xlu0 %v2461_v1, %s2397_s9  ;;  %352 = vrot.lane.b32.xlu1 %v2456_v0, %s2398_s10 }
  0x2e   :  { %354 = vrot.lane.b32.xlu0 %v2470_v2, %s2398_s10  ;;  %657 = vrot.lane.b32.xlu1 %v2515_v3, %s2391_s25 }
  0x32   :  { %659 = vrot.lane.b32.xlu0 %v2524_v4, %s2391_s25  ;;  %350 = vrot.lane.b32.xlu1 %v2461_v1, %s2398_s10 }
  0x36   :  { %309 = vrot.lane.b32.xlu0 %v2456_v0, %s2399_s15  ;;  %311 = vrot.lane.b32.xlu1 %v2470_v2, %s2399_s15 }
  0x3a   :  { %614 = vrot.lane.b32.xlu0 %v2515_v3, %s2392_s28  ;;  %616 = vrot.lane.b32.xlu1 %v2524_v4, %s2392_s28 }
  0x3e   :  { %307 = vrot.lane.b32.xlu0 %v2461_v1, %s2399_s15  ;;  %266 = vrot.lane.b32.xlu1 %v2456_v0, %s2400_s16 }
  0x42   :  { %268 = vrot.lane.b32.xlu0 %v2470_v2, %s2400_s16  ;;  %571 = vrot.lane.b32.xlu1 %v2515_v3, %s2393_s29 }
  0x46   :  { %573 = vrot.lane.b32.xlu0 %v2524_v4, %s2393_s29  ;;  %264 = vrot.lane.b32.xlu1 %v2461_v1, %s2400_s16 }
  0x4a   :  { %223 = vrot.lane.b32.xlu0 %v2456_v0, %s2401_s17  ;;  %225 = vrot.lane.b32.xlu1 %v2470_v2, %s2401_s17 }
  0x4e   :  { %528 = vrot.lane.b32.xlu0 %v2515_v3, %s2394_s30  ;;  %530 = vrot.lane.b32.xlu1 %v2524_v4, %s2394_s30 }
  0x52   :  { %221 = vrot.lane.b32.xlu0 %v2461_v1, %s2401_s17  ;;  %180 = vrot.lane.b32.xlu1 %v2456_v0, %s2402_s18 }
  0x56   :  { %182 = vrot.lane.b32.xlu0 %v2470_v2, %s2402_s18  ;;  %485 = vrot.lane.b32.xlu1 %v2515_v3, %s2395_s7 }
  0x5a   :  { %487 = vrot.lane.b32.xlu0 %v2524_v4, %s2395_s7  ;;  %178 = vrot.lane.b32.xlu1 %v2461_v1, %s2402_s18 }
  0x5e   :  { %137 = vrot.lane.b32.xlu0 %v2456_v0, %s3763_s19  ;;  %139 = vrot.lane.b32.xlu1 %v2470_v2, %s3763_s19 }
  0x62   :  { %442 = vrot.lane.b32.xlu0 %v2515_v3, %s2396_s8  ;;  %444 = vrot.lane.b32.xlu1 %v2524_v4, %s2396_s8 }
  0x66   :  { %135 = vrot.lane.b32.xlu0 %v2461_v1, %s3763_s19  ;;  %94 = vrot.lane.b32.xlu1 %v2456_v0, %s3759_s20 }
  0x6a   :  { %96 = vrot.lane.b32.xlu0 %v2470_v2, %s3759_s20  ;;  %399 = vrot.lane.b32.xlu1 %v2515_v3, %s2397_s9 }
  0x6e   :  { %401 = vrot.lane.b32.xlu0 %v2524_v4, %s2397_s9  ;;  %92 = vrot.lane.b32.xlu1 %v2461_v1, %s3759_s20 }
  0x72   :  { %51 = vrot.lane.b32.xlu0 %v2456_v0, %s3757_s21  ;;  %53 = vrot.lane.b32.xlu1 %v2470_v2, %s3757_s21 }
  0x74   :  { %v654_v5 = vpop.permute.xlu0 %653  ;;  %v652_v6 = vpop.permute.xlu1 %651 }
  0x75   :  { %v670_v10 = vsel %vm669_vm0, %v652_v6, %v654_v5 }
  0x76   :  { %356 = vrot.lane.b32.xlu0 %v2515_v3, %s2398_s10  ;;  %358 = vrot.lane.b32.xlu1 %v2524_v4, %s2398_s10 }
  0x78   :  { %v2598_v7 = vpop.permute.xlu0 %655  ;;  %v611_v8 = vpop.permute.xlu1 %610 }
  0x79   :  { %v671_v9 = vsel %vm669_vm0, %v654_v5, %v2598_v7 }
  0x7a   :  { %1293 = vmatprep.subr.mxu0 %v671_v9  ;;  %49 = vrot.lane.b32.xlu0 %v2461_v1, %s3757_s21 }
  0x7b   :  { %313 = vrot.lane.b32.xlu1 %v2515_v3, %s2399_s15  ;;  %1294 = vmatpush1.msra.mxu0 %v670_v10 }
  0x7c   :  { %v2607_v11 = vpop.permute.xlu0 %612  ;;  %v609_v12 = vpop.permute.xlu1 %608 }
  0x7d   :  { %v628_v13 = vsel %vm626_vm1, %v611_v8, %v2607_v11  ;;  %v627_v14 = vsel %vm626_vm1, %v609_v12, %v611_v8 }
  0x7e   :  { %315 = vrot.lane.b32.xlu0 %v2524_v4, %s2399_s15  ;;  %1295 = vmatprep.subr.mxu0 %v628_v13 }
  0x7f   :  { %270 = vrot.lane.b32.xlu1 %v2515_v3, %s2400_s16  ;;  %1296 = vmatpush1.msra.mxu0 %v627_v14 }
  0x80   :  { %v568_v15 = vpop.permute.xlu0 %567  ;;  %v2616_v16 = vpop.permute.xlu1 %569 }
  0x81   :  { %v585_v17 = vsel %vm583_vm2, %v568_v15, %v2616_v16 }
  0x82   :  { %272 = vrot.lane.b32.xlu0 %v2524_v4, %s2400_s16  ;;  %1297 = vmatprep.subr.mxu0 %v585_v17 }
  0x83   :  { %1040 = vrot.lane.b32.xlu1 %v2456_v0, %s3761_s22 }
  0x84   :  { %v566_v18 = vpop.permute.xlu0 %565  ;;  %v525_v19 = vpop.permute.xlu1 %524 }
  0x85   :  { %v584_v20 = vsel %vm583_vm2, %v566_v18, %v568_v15 }
  0x86   :  { %1042 = vrot.lane.b32.xlu0 %v2470_v2, %s3761_s22  ;;  %1298 = vmatpush1.msra.mxu0 %v584_v20 }
  0x87   :  { %1038 = vrot.lane.b32.xlu1 %v2461_v1, %s3761_s22 }
  0x88   :  { %v2629_v21 = vpop.permute.xlu0 %526  ;;  %v523_v22 = vpop.permute.xlu1 %522 }
  0x89   :  { %v542_v23 = vsel %vm540_vm3, %v525_v19, %v2629_v21  ;;  %v541_v24 = vsel %vm540_vm3, %v523_v22, %v525_v19 }
  0x8a   :  { %227 = vrot.lane.b32.xlu0 %v2515_v3, %s2401_s17  ;;  %1299 = vmatprep.subr.mxu0 %v542_v23 }
  0x8b   :  { %229 = vrot.lane.b32.xlu1 %v2524_v4, %s2401_s17  ;;  %1300 = vmatpush1.msra.mxu0 %v541_v24 }
  0x8c   :  { %v482_v25 = vpop.permute.xlu0 %481  ;;  %v2638_v26 = vpop.permute.xlu1 %483 }
  0x8d   :  { %v499_v27 = vsel %vm497_vm4, %v482_v25, %v2638_v26 }
  0x8e   :  { %997 = vrot.lane.b32.xlu0 %v2456_v0, %s2407_s23  ;;  %1301 = vmatprep.subr.mxu0 %v499_v27 }
  0x8f   :  { %999 = vrot.lane.b32.xlu1 %v2470_v2, %s2407_s23 }
  0x90   :  { %v480_v28 = vpop.permute.xlu0 %479  ;;  %v439_v29 = vpop.permute.xlu1 %438 }
  0x91   :  { %v498_v30 = vsel %vm497_vm4, %v480_v28, %v482_v25 }
  0x92   :  { %995 = vrot.lane.b32.xlu0 %v2461_v1, %s2407_s23  ;;  %1302 = vmatpush1.msra.mxu0 %v498_v30 }
  0x93   :  { %184 = vrot.lane.b32.xlu1 %v2515_v3, %s2402_s18 }
  0x94   :  { %v2651_v31 = vpop.permute.xlu0 %440  ;;  %v437_v32 = vpop.permute.xlu1 %436 }
  0x95   :  { %v456_v33 = vsel %vm454_vm5, %v439_v29, %v2651_v31  ;;  %v455_v34 = vsel %vm454_vm5, %v437_v32, %v439_v29  ;;  %v2796_v32 = vld [vmem:[%s3750_s0 + $0x28] sm:$0xff] }
  0x96   :  { %186 = vrot.lane.b32.xlu0 %v2524_v4, %s2402_s18  ;;  %1303 = vmatprep.subr.mxu0 %v456_v33 }
  0x97   :  { %954 = vrot.lane.b32.xlu1 %v2456_v0, %s2408_s24  ;;  %1304 = vmatpush1.msra.mxu0 %v455_v34  ;;  %v2803_v34 = vld [vmem:[%s3750_s0 + $0x30] sm:$0xff] }
  0x98   :  { %v396_v35 = vpop.permute.xlu0 %395  ;;  %v2660_v36 = vpop.permute.xlu1 %397 }
  0x99   :  { %v413_v37 = vsel %vm3773_vm6, %v396_v35, %v2660_v36 }
  0x9a   :  { %956 = vrot.lane.b32.xlu0 %v2470_v2, %s2408_s24  ;;  %1305 = vmatprep.subr.mxu0 %v413_v37 }
  0x9b   :  { %952 = vrot.lane.b32.xlu1 %v2461_v1, %s2408_s24 }
  0x9c   :  { %v394_v38 = vpop.permute.xlu0 %393  ;;  %v353_v39 = vpop.permute.xlu1 %352 }
  0x9d   :  { %v412_v40 = vsel %vm3773_vm6, %v394_v38, %v396_v35 }
  0x9e   :  { %141 = vrot.lane.b32.xlu0 %v2515_v3, %s3763_s19  ;;  %1306 = vmatpush1.msra.mxu0 %v412_v40 }
  0x9f   :  { %143 = vrot.lane.b32.xlu1 %v2524_v4, %s3763_s19 }
  0xa0   :  { %v2673_v41 = vpop.permute.xlu0 %354  ;;  %v658_v42 = vpop.permute.xlu1 %657 }
  0xa1   :  { %v370_v43 = vsel %vm3765_vm7, %v353_v39, %v2673_v41  ;;  %v672_v48 = vsel %vm669_vm0, %v2598_v7, %v658_v42 }
  0xa2   :  { %911 = vrot.lane.b32.xlu0 %v2456_v0, %s2409_s26  ;;  %1307 = vmatprep.subr.mxu0 %v370_v43 }
  0xa3   :  { %913 = vrot.lane.b32.xlu1 %v2470_v2, %s2409_s26 }
  0xa4   :  { %v2681_v44 = vpop.permute.xlu0 %659  ;;  %v351_v45 = vpop.permute.xlu1 %350 }
  0xa5   :  { %v369_v46 = vsel %vm3765_vm7, %v351_v45, %v353_v39  ;;  %v673_v47 = vsel %vm669_vm0, %v658_v42, %v2681_v44 }
  0xa6   :  { %909 = vrot.lane.b32.xlu0 %v2461_v1, %s2409_s26  ;;  %1308 = vmatpush1.msra.mxu0 %v369_v46 }
  0xa7   :  { %98 = vrot.lane.b32.xlu1 %v2515_v3, %s3759_s20  ;;  %1364 = vmatprep.subr.mxu1 %v673_v47 }
  0xa8   :  { %1365 = vmatpush1.msra.mxu1 %v672_v48  ;;  %v310_v49 = vpop.permute.xlu0 %309  ;;  %v2692_v50 = vpop.permute.xlu1 %311 }
  0xa9   :  { %v327_v51 = vsel %vm3772_vm8, %v310_v49, %v2692_v50 }
  0xaa   :  { %100 = vrot.lane.b32.xlu0 %v2524_v4, %s3759_s20  ;;  %1309 = vmatprep.subr.mxu0 %v327_v51  ;;  %s2414_s20 = smov 67  }
  0xab   :  { %868 = vrot.lane.b32.xlu1 %v2456_v0, %s2410_s27 }
  0xac   :  { %v615_v52 = vpop.permute.xlu0 %614  ;;  %v2700_v53 = vpop.permute.xlu1 %616 }
  0xad   :  { %v630_v54 = vsel %vm626_vm1, %v615_v52, %v2700_v53  ;;  %v629_v55 = vsel %vm626_vm1, %v2607_v11, %v615_v52 }
  0xae   :  { %870 = vrot.lane.b32.xlu0 %v2470_v2, %s2410_s27  ;;  %1366 = vmatprep.subr.mxu1 %v630_v54 }
  0xaf   :  { %866 = vrot.lane.b32.xlu1 %v2461_v1, %s2410_s27  ;;  %1367 = vmatpush1.msra.mxu1 %v629_v55 }
  0xb0   :  { %v308_v56 = vpop.permute.xlu0 %307  ;;  %v267_v57 = vpop.permute.xlu1 %266 }
  0xb1   :  { %v326_v58 = vsel %vm3772_vm8, %v308_v56, %v310_v49 }
  0xb2   :  { %55 = vrot.lane.b32.xlu0 %v2515_v3, %s3757_s21  ;;  %1310 = vmatpush1.msra.mxu0 %v326_v58 }
  0xb3   :  { %57 = vrot.lane.b32.xlu1 %v2524_v4, %s3757_s21 }
  0xb4   :  { %v2715_v59 = vpop.permute.xlu0 %268  ;;  %v572_v60 = vpop.permute.xlu1 %571 }
  0xb5   :  { %v284_v61 = vsel %vm3766_vm9, %v267_v57, %v2715_v59  ;;  %v586_v7 = vsel %vm583_vm2, %v2616_v16, %v572_v60 }
  0xb6   :  { %825 = vrot.lane.b32.xlu0 %v2456_v0, %s2411_s11  ;;  %1311 = vmatprep.subr.mxu0 %v284_v61 }
  0xb7   :  { %827 = vrot.lane.b32.xlu1 %v2470_v2, %s2411_s11 }
  0xb8   :  { %v2723_v62 = vpop.permute.xlu0 %573  ;;  %v265_v63 = vpop.permute.xlu1 %264 }
  0xb9   :  { %v283_v5 = vsel %vm3766_vm9, %v265_v63, %v267_v57  ;;  %v587_v6 = vsel %vm583_vm2, %v572_v60, %v2723_v62 }
  0xba   :  { %823 = vrot.lane.b32.xlu0 %v2461_v1, %s2411_s11  ;;  %1312 = vmatpush1.msra.mxu0 %v283_v5 }
  0xbb   :  { %782 = vrot.lane.b32.xlu1 %v2456_v0, %s2412_s12  ;;  %1368 = vmatprep.subr.mxu1 %v587_v6 }
  0xbc   :  { %1369 = vmatpush1.msra.mxu1 %v586_v7  ;;  %v224_v8 = vpop.permute.xlu0 %223  ;;  %v2734_v9 = vpop.permute.xlu1 %225 }
  0xbd   :  { %v241_v10 = vsel %vm3767_vm10, %v224_v8, %v2734_v9 }
  0xbe   :  { %784 = vrot.lane.b32.xlu0 %v2470_v2, %s2412_s12  ;;  %1313 = vmatprep.subr.mxu0 %v241_v10 }
  0xbf   :  { %780 = vrot.lane.b32.xlu1 %v2461_v1, %s2412_s12 }
  0xc0   :  { %v529_v11 = vpop.permute.xlu0 %528  ;;  %v2742_v12 = vpop.permute.xlu1 %530 }
  0xc1   :  { %v544_v13 = vsel %vm540_vm3, %v529_v11, %v2742_v12  ;;  %v543_v14 = vsel %vm540_vm3, %v2629_v21, %v529_v11  ;;  %v2766_v21 = vld [vmem:[%s3751_s1 + $0x8] sm:$0xff] }
  0xc2   :  { %739 = vrot.lane.b32.xlu0 %v2456_v0, %s2413_s13  ;;  %1370 = vmatprep.subr.mxu1 %v544_v13 }
  0xc3   :  { %741 = vrot.lane.b32.xlu1 %v2470_v2, %s2413_s13  ;;  %1371 = vmatpush1.msra.mxu1 %v543_v14 }
  0xc4   :  { %v222_v15 = vpop.permute.xlu0 %221  ;;  %v181_v16 = vpop.permute.xlu1 %180  ;;  %2322 = vmatprep.mubr.msk.f32.mxu0 %vm1289_vm12, %v2766_v21  ;;  %2323 = vmatprep.mubr.msk.f32.mxu1 %vm1289_vm12, %v2766_v21 }
  0xc5   :  { %v240_v17 = vsel %vm3767_vm10, %v222_v15, %v224_v8 }
  0xc6   :  { %1044 = vrot.lane.b32.xlu0 %v2515_v3, %s3761_s22  ;;  %1314 = vmatpush1.msra.mxu0 %v240_v17 }
  0xc7   :  { %1046 = vrot.lane.b32.xlu1 %v2524_v4, %s3761_s22  ;;  %s3778_s22 = smov 127  }
  0xc8   :  { %v2757_v18 = vpop.permute.xlu0 %182  ;;  %v486_v19 = vpop.permute.xlu1 %485 }
  0xc9   :  { %v198_v20 = vsel %vm3768_vm11, %v181_v16, %v2757_v18  ;;  %v500_v27 = vsel %vm497_vm4, %v2638_v26, %v486_v19 }
  0xca   :  { %737 = vrot.lane.b32.xlu0 %v2461_v1, %s2413_s13  ;;  %1315 = vmatprep.subr.mxu0 %v198_v20 }
  0xcb   :  { %696 = vrot.lane.b32.xlu1 %v2456_v0, %s2414_s20 }
  0xcc   :  { %v2772_v22 = vpop.permute.xlu0 %487  ;;  %v179_v23 = vpop.permute.xlu1 %178 }
  0xcd   :  { %v197_v24 = vsel %vm3768_vm11, %v179_v23, %v181_v16  ;;  %v501_v25 = vsel %vm497_vm4, %v486_v19, %v2772_v22 }
  0xce   :  { %698 = vrot.lane.b32.xlu0 %v2470_v2, %s2414_s20  ;;  %1316 = vmatpush1.msra.mxu0 %v197_v24 }
  0xcf   :  { %1001 = vrot.lane.b32.xlu1 %v2515_v3, %s2407_s23  ;;  %1372 = vmatprep.subr.mxu1 %v501_v25 }
  0xd0   :  { %1373 = vmatpush1.msra.mxu1 %v500_v27  ;;  %v138_v28 = vpop.permute.xlu0 %137  ;;  %v2785_v29 = vpop.permute.xlu1 %139 }
  0xd1   :  { %v155_v30 = vsel %vm3769_vm13, %v138_v28, %v2785_v29 }
  0xd2   :  { %1003 = vrot.lane.b32.xlu0 %v2524_v4, %s2407_s23  ;;  %1317 = vmatprep.subr.mxu0 %v155_v30 }
  0xd3   :  { %694 = vrot.lane.b32.xlu1 %v2461_v1, %s2414_s20 }
  0xd4   :  { %v443_v26 = vpop.permute.xlu0 %442  ;;  %v2798_v33 = vpop.permute.xlu1 %444 }
  0xd5   :  { %v458_v35 = vsel %vm454_vm5, %v443_v26, %v2798_v33  ;;  %v457_v37 = vsel %vm454_vm5, %v2651_v31, %v443_v26 }
  0xd6   :  { %661 = vrot.lane.b32.xlu0 %v2796_v32, %s2391_s25  ;;  %1374 = vmatprep.subr.mxu1 %v458_v35 }
  0xd7   :  { %663 = vrot.lane.b32.xlu1 %v2803_v34, %s2391_s25  ;;  %1375 = vmatpush1.msra.mxu1 %v457_v37 }
  0xd8   :  { %v136_v38 = vpop.permute.xlu0 %135  ;;  %v95_v39 = vpop.permute.xlu1 %94 }
  0xd9   :  { %v154_v40 = vsel %vm3769_vm13, %v136_v38, %v138_v28 }
  0xda   :  { %958 = vrot.lane.b32.xlu0 %v2515_v3, %s2408_s24  ;;  %1318 = vmatpush1.msra.mxu0 %v154_v40 }
  0xdb   :  { %960 = vrot.lane.b32.xlu1 %v2524_v4, %s2408_s24 }
  0xdc   :  { %v2818_v31 = vpop.permute.xlu0 %96  ;;  %v400_v42 = vpop.permute.xlu1 %399 }
  0xdd   :  { %v112_v43 = vsel %vm3770_vm14, %v95_v39, %v2818_v31  ;;  %v414_v49 = vsel %vm3773_vm6, %v2660_v36, %v400_v42 }
  0xde   :  { %618 = vrot.lane.b32.xlu0 %v2796_v32, %s2392_s28  ;;  %1319 = vmatprep.subr.mxu0 %v112_v43 }
  0xdf   :  { %620 = vrot.lane.b32.xlu1 %v2803_v34, %s2392_s28 }
  0xe0   :  { %v2826_v45 = vpop.permute.xlu0 %401  ;;  %v93_v46 = vpop.permute.xlu1 %92 }
  0xe1   :  { %v111_v47 = vsel %vm3770_vm14, %v93_v46, %v95_v39  ;;  %v415_v48 = vsel %vm3773_vm6, %v400_v42, %v2826_v45  ;;  %v2941_v39 = vld [vmem:[%s3750_s0 + $0x40] sm:$0xff]  ;;  %vm712_vm6 = vcmask 547840  }
  0xe2   :  { %915 = vrot.lane.b32.xlu0 %v2515_v3, %s2409_s26  ;;  %1320 = vmatpush1.msra.mxu0 %v111_v47 }
  0xe3   :  { %917 = vrot.lane.b32.xlu1 %v2524_v4, %s2409_s26  ;;  %1376 = vmatprep.subr.mxu1 %v415_v48 }
  0xe4   :  { %1377 = vmatpush1.msra.mxu1 %v414_v49  ;;  %v52_v51 = vpop.permute.xlu0 %51  ;;  %v2837_v52 = vpop.permute.xlu1 %53 }
  0xe5   :  { %v69_v54 = vsel %vm3771_vm15, %v52_v51, %v2837_v52 }
  0xe6   :  { %575 = vrot.lane.b32.xlu0 %v2796_v32, %s2393_s29  ;;  %1321 = vmatprep.subr.mxu0 %v69_v54 }
  0xe7   :  { %577 = vrot.lane.b32.xlu1 %v2803_v34, %s2393_s29 }
  0xe8   :  { %v357_v55 = vpop.permute.xlu0 %356  ;;  %v2845_v56 = vpop.permute.xlu1 %358 }
  0xe9   :  { %v372_v36 = vsel %vm3765_vm7, %v357_v55, %v2845_v56  ;;  %v371_v57 = vsel %vm3765_vm7, %v2673_v41, %v357_v55  ;;  %vm1056_vm7 = vcmask 359424  }
  0xea   :  { %872 = vrot.lane.b32.xlu0 %v2515_v3, %s2410_s27  ;;  %1378 = vmatprep.subr.mxu1 %v372_v36 }
  0xeb   :  { %874 = vrot.lane.b32.xlu1 %v2524_v4, %s2410_s27  ;;  %1379 = vmatpush1.msra.mxu1 %v371_v57 }
  0xec   :  { %v50_v58 = vpop.permute.xlu0 %49 }
  0xed   :  { %v314_v60 = vpop.permute.xlu1 %313  ;;  %v68_v61 = vsel %vm3771_vm15, %v50_v58, %v52_v51 }
  0xee   :  { %532 = vrot.lane.b32.xlu0 %v2796_v32, %s2394_s30  ;;  %1322 = vmatpush1.msra.mxu0 %v68_v61  ;;  %v328_v6 = vsel %vm3772_vm8, %v2692_v50, %v314_v60 }
  0xef   :  { %534 = vrot.lane.b32.xlu1 %v2803_v34, %s2394_s30  ;;  %1323 = vmatprep.subr.mxu0 %v2456_v0 }
  0xf0   :  { %v2861_v41 = vpop.permute.xlu0 %315  ;;  %1324 = vmatpush1.msra.mxu0 %v2461_v1 }
  0xf1   :  { %v271_v63 = vpop.permute.xlu1 %270  ;;  %v329_v5 = vsel %vm3772_vm8, %v314_v60, %v2861_v41  ;;  %vm755_vm8 = vcmask 539648  }
  0xf2   :  { %829 = vrot.lane.b32.xlu0 %v2515_v3, %s2411_s11  ;;  %1380 = vmatprep.subr.mxu1 %v329_v5  ;;  %v285_v8 = vsel %vm3766_vm9, %v2715_v59, %v271_v63 }
  0xf3   :  { %831 = vrot.lane.b32.xlu1 %v2524_v4, %s2411_s11  ;;  %1381 = vmatpush1.msra.mxu1 %v328_v6 }
  0xf4   :  { %v2872_v0 = vpop.permute.xlu0 %272 }
  0xf5   :  { %v1041_v7 = vpop.permute.xlu1 %1040  ;;  %v286_v1 = vsel %vm3766_vm9, %v271_v63, %v2872_v0  ;;  %vm1013_vm9 = vcmask 367616  }
  0xf6   :  { %489 = vrot.lane.b32.xlu0 %v2796_v32, %s2395_s7  ;;  %1382 = vmatprep.subr.mxu1 %v286_v1 }
  0xf7   :  { %491 = vrot.lane.b32.xlu1 %v2803_v34, %s2395_s7  ;;  %1383 = vmatpush1.msra.mxu1 %v285_v8 }
  0xf8   :  { %v2882_v50 = vpop.permute.xlu0 %1042 }
  0xf9   :  { %v1039_v10 = vpop.permute.xlu1 %1038  ;;  %v1058_v11 = vsel %vm1056_vm7, %v1041_v7, %v2882_v50 }
  0xfa   :  { %786 = vrot.lane.b32.xlu0 %v2515_v3, %s2412_s12  ;;  %1339 = vmatprep.subr.mxu0 %v1058_v11  ;;  %v1057_v13 = vsel %vm1056_vm7, %v1039_v10, %v1041_v7 }
  0xfb   :  { %788 = vrot.lane.b32.xlu1 %v2524_v4, %s2412_s12  ;;  %1340 = vmatpush2.msra.mxu0 %v1057_v13 }
  0xfc   :  { %v228_v59 = vpop.permute.xlu0 %227 }
  0xfd   :  { %v2891_v14 = vpop.permute.xlu1 %229  ;;  %v242_v15 = vsel %vm3767_vm10, %v2734_v9, %v228_v59 }
  0xfe   :  { %446 = vrot.lane.b32.xlu0 %v2796_v32, %s2396_s8  ;;  %v243_v16 = vsel %vm3767_vm10, %v228_v59, %v2891_v14  ;;  %vm970_vm10 = vcmask 375808  }
  0xff   :  { %448 = vrot.lane.b32.xlu1 %v2803_v34, %s2396_s8  ;;  %1384 = vmatprep.subr.mxu1 %v243_v16 }
 0x100   :  { %1385 = vmatpush1.msra.mxu1 %v242_v15  ;;  %v998_v17 = vpop.permute.xlu0 %997 }
 0x101   :  { %v2901_v19 = vpop.permute.xlu1 %999 }
 0x102   :  { %743 = vrot.lane.b32.xlu0 %v2515_v3, %s2413_s13  ;;  %v1015_v9 = vsel %vm1013_vm9, %v998_v17, %v2901_v19 }
 0x103   :  { %745 = vrot.lane.b32.xlu1 %v2524_v4, %s2413_s13  ;;  %1341 = vmatprep.subr.mxu0 %v1015_v9 }
 0x104   :  { %v996_v20 = vpop.permute.xlu0 %995 }
 0x105   :  { %v185_v23 = vpop.permute.xlu1 %184  ;;  %v1014_v24 = vsel %vm1013_vm9, %v996_v20, %v998_v17 }
 0x106   :  { %403 = vrot.lane.b32.xlu0 %v2796_v32, %s2397_s9  ;;  %1342 = vmatpush2.msra.mxu0 %v1014_v24  ;;  %v199_v30 = vsel %vm3768_vm11, %v2757_v18, %v185_v23 }
 0x107   :  { %405 = vrot.lane.b32.xlu1 %v2803_v34, %s2397_s9 }
 0x108   :  { %v2914_v25 = vpop.permute.xlu0 %186 }
 0x109   :  { %v955_v27 = vpop.permute.xlu1 %954  ;;  %v200_v28 = vsel %vm3768_vm11, %v185_v23, %v2914_v25  ;;  %vm927_vm11 = vcmask 384000  }
 0x10a   :  { %700 = vrot.lane.b32.xlu0 %v2515_v3, %s2414_s20  ;;  %1386 = vmatprep.subr.mxu1 %v200_v28 }
 0x10b   :  { %702 = vrot.lane.b32.xlu1 %v2524_v4, %s2414_s20  ;;  %1387 = vmatpush1.msra.mxu1 %v199_v30  ;;  %v2936_v4 = vld [vmem:[%s3750_s0 + $0x38] sm:$0xff] }
 0x10c   :  { %v2924_v26 = vpop.permute.xlu0 %956 }
 0x10d   :  { %v953_v35 = vpop.permute.xlu1 %952  ;;  %v972_v37 = vsel %vm970_vm10, %v955_v27, %v2924_v26 }
 0x10e   :  { %360 = vrot.lane.b32.xlu0 %v2796_v32, %s2398_s10  ;;  %1343 = vmatprep.subr.mxu0 %v972_v37  ;;  %v971_v38 = vsel %vm970_vm10, %v953_v35, %v955_v27 }
 0x10f   :  { %362 = vrot.lane.b32.xlu1 %v2803_v34, %s2398_s10  ;;  %1344 = vmatpush2.msra.mxu0 %v971_v38 }
 0x110   :  { %v142_v18 = vpop.permute.xlu0 %141 }
 0x111   :  { %v2943_v40 = vpop.permute.xlu1 %143  ;;  %v156_v42 = vsel %vm3769_vm13, %v2785_v29, %v142_v18 }
 0x112   :  { %665 = vrot.lane.b32.xlu0 %v2936_v4, %s2391_s25  ;;  %v157_v43 = vsel %vm3769_vm13, %v142_v18, %v2943_v40  ;;  %vm884_vm13 = vcmask 392192  }
 0x113   :  { %667 = vrot.lane.b32.xlu1 %v2941_v39, %s2391_s25  ;;  %1388 = vmatprep.subr.mxu1 %v157_v43  ;;  %s3776_s25 = smov 125  }
 0x114   :  { %1389 = vmatpush1.msra.mxu1 %v156_v42  ;;  %v912_v46 = vpop.permute.xlu0 %911 }
 0x115   :  { %v2953_v47 = vpop.permute.xlu1 %913 }
 0x116   :  { %317 = vrot.lane.b32.xlu0 %v2796_v32, %s2399_s15  ;;  %v929_v29 = vsel %vm927_vm11, %v912_v46, %v2953_v47 }
 0x117   :  { %319 = vrot.lane.b32.xlu1 %v2803_v34, %s2399_s15  ;;  %1345 = vmatprep.subr.mxu0 %v929_v29 }
 0x118   :  { %v910_v48 = vpop.permute.xlu0 %909 }
 0x119   :  { %v99_v49 = vpop.permute.xlu1 %98  ;;  %v928_v51 = vsel %vm927_vm11, %v910_v48, %v912_v46  ;;  %v3057_v46 = vld [vmem:[%s3751_s1] sm:$0xff]  ;;  %s3779_s1 = smov 44  }
 0x11a   :  { %622 = vrot.lane.b32.xlu0 %v2936_v4, %s2392_s28  ;;  %1346 = vmatpush2.msra.mxu0 %v928_v51  ;;  %v113_v57 = vsel %vm3770_vm14, %v2818_v31, %v99_v49 }
 0x11b   :  { %624 = vrot.lane.b32.xlu1 %v2941_v39, %s2392_s28  ;;  %s3777_s28 = smov 126  }
 0x11c   :  { %v2966_v54 = vpop.permute.xlu0 %100 }
 0x11d   :  { %v869_v55 = vpop.permute.xlu1 %868  ;;  %v114_v36 = vsel %vm3770_vm14, %v99_v49, %v2966_v54  ;;  %vm3775_vm14 = vcmask 523264  }
 0x11e   :  { %274 = vrot.lane.b32.xlu0 %v2796_v32, %s2400_s16  ;;  %1390 = vmatprep.subr.mxu1 %v114_v36 }
 0x11f   :  { %276 = vrot.lane.b32.xlu1 %v2803_v34, %s2400_s16  ;;  %1391 = vmatpush1.msra.mxu1 %v113_v57 }
 0x120   :  { %v2976_v58 = vpop.permute.xlu0 %870 }
 0x121   :  { %v867_v60 = vpop.permute.xlu1 %866  ;;  %v886_v61 = vsel %vm884_vm13, %v869_v55, %v2976_v58 }
 0x122   :  { %579 = vrot.lane.b32.xlu0 %v2936_v4, %s2393_s29  ;;  %1347 = vmatprep.subr.mxu0 %v886_v61  ;;  %v885_v63 = vsel %vm884_vm13, %v867_v60, %v869_v55 }
 0x123   :  { %581 = vrot.lane.b32.xlu1 %v2941_v39, %s2393_s29  ;;  %1348 = vmatpush2.msra.mxu0 %v885_v63 }
 0x124   :  { %v56_v31 = vpop.permute.xlu0 %55 }
 0x125   :  { %v2985_v5 = vpop.permute.xlu1 %57  ;;  %v70_v6 = vsel %vm3771_vm15, %v2837_v52, %v56_v31 }
 0x126   :  { %231 = vrot.lane.b32.xlu0 %v2796_v32, %s2401_s17  ;;  %v71_v7 = vsel %vm3771_vm15, %v56_v31, %v2985_v5  ;;  %vm3774_vm15 = vcmask 531456  }
 0x127   :  { %233 = vrot.lane.b32.xlu1 %v2803_v34, %s2401_s17  ;;  %1392 = vmatprep.subr.mxu1 %v71_v7 }
 0x128   :  { %1393 = vmatpush1.msra.mxu1 %v70_v6  ;;  %v826_v1 = vpop.permute.xlu0 %825 }
 0x129   :  { %v2995_v8 = vpop.permute.xlu1 %827  ;;  %1394 = vmatprep.subr.mxu1 %v2515_v3 }
 0x12a   :  { %536 = vrot.lane.b32.xlu0 %v2936_v4, %s2394_s30  ;;  %v843_v52 = vsel %vm3775_vm14, %v826_v1, %v2995_v8  ;;  %1395 = vmatpush1.msra.mxu1 %v2470_v2 }
 0x12b   :  { %538 = vrot.lane.b32.xlu1 %v2941_v39, %s2394_s30  ;;  %1349 = vmatprep.subr.mxu0 %v843_v52 }
 0x12c   :  { %v824_v10 = vpop.permute.xlu0 %823 }
 0x12d   :  { %v783_v11 = vpop.permute.xlu1 %782  ;;  %v842_v13 = vsel %vm3775_vm14, %v824_v10, %v826_v1 }
 0x12e   :  { %188 = vrot.lane.b32.xlu0 %v2796_v32, %s2402_s18  ;;  %1350 = vmatpush2.msra.mxu0 %v842_v13 }
 0x12f   :  { %190 = vrot.lane.b32.xlu1 %v2803_v34, %s2402_s18 }
 0x130   :  { %v3010_v3 = vpop.permute.xlu0 %784 }
 0x131   :  { %v781_v59 = vpop.permute.xlu1 %780  ;;  %v800_v2 = vsel %vm3774_vm15, %v783_v11, %v3010_v3 }
 0x132   :  { %493 = vrot.lane.b32.xlu0 %v2936_v4, %s2395_s7  ;;  %1351 = vmatprep.subr.mxu0 %v800_v2  ;;  %v799_v15 = vsel %vm3774_vm15, %v781_v59, %v783_v11 }
 0x133   :  { %495 = vrot.lane.b32.xlu1 %v2941_v39, %s2395_s7  ;;  %1352 = vmatpush2.msra.mxu0 %v799_v15 }
 0x134   :  { %v740_v16 = vpop.permute.xlu0 %739 }
 0x135   :  { %v3019_v17 = vpop.permute.xlu1 %741 }
 0x136   :  { %145 = vrot.lane.b32.xlu0 %v2796_v32, %s3776_s25  ;;  %v757_v9 = vsel %vm755_vm8, %v740_v16, %v3019_v17 }
 0x137   :  { %147 = vrot.lane.b32.xlu1 %v2803_v34, %s3776_s25  ;;  %1353 = vmatprep.subr.mxu0 %v757_v9 }
 0x138   :  { %v1045_v20 = vpop.permute.xlu0 %1044 }
 0x139   :  { %v3027_v23 = vpop.permute.xlu1 %1046  ;;  %v1059_v24 = vsel %vm1056_vm7, %v2882_v50, %v1045_v20 }
 0x13a   :  { %450 = vrot.lane.b32.xlu0 %v2936_v4, %s2396_s8  ;;  %v1060_v27 = vsel %vm1056_vm7, %v1045_v20, %v3027_v23 }
 0x13b   :  { %452 = vrot.lane.b32.xlu1 %v2941_v39, %s2396_s8  ;;  %1410 = vmatprep.subr.mxu1 %v1060_v27 }
 0x13c   :  { %1411 = vmatpush2.msra.mxu1 %v1059_v24  ;;  %v738_v28 = vpop.permute.xlu0 %737 }
 0x13d   :  { %v697_v30 = vpop.permute.xlu1 %696  ;;  %v756_v35 = vsel %vm755_vm8, %v738_v28, %v740_v16 }
 0x13e   :  { %102 = vrot.lane.b32.xlu0 %v2796_v32, %s3777_s28  ;;  %1354 = vmatpush2.msra.mxu0 %v756_v35 }
 0x13f   :  { %104 = vrot.lane.b32.xlu1 %v2803_v34, %s3777_s28 }
 0x140   :  { %v3042_v50 = vpop.permute.xlu0 %698 }
 0x141   :  { %v1002_v37 = vpop.permute.xlu1 %1001  ;;  %v714_v38 = vsel %vm712_vm6, %v697_v30, %v3042_v50 }
 0x142   :  { %407 = vrot.lane.b32.xlu0 %v2936_v4, %s2397_s9  ;;  %1355 = vmatprep.subr.mxu0 %v714_v38  ;;  %v1016_v48 = vsel %vm1013_vm9, %v2901_v19, %v1002_v37 }
 0x143   :  { %409 = vrot.lane.b32.xlu1 %v2941_v39, %s2397_s9 }
 0x144   :  { %v3050_v18 = vpop.permute.xlu0 %1003 }
 0x145   :  { %v695_v42 = vpop.permute.xlu1 %694  ;;  %v1017_v43 = vsel %vm1013_vm9, %v1002_v37, %v3050_v18 }
 0x146   :  { %59 = vrot.lane.b32.xlu0 %v2796_v32, %s3778_s22  ;;  %v713_v29 = vsel %vm712_vm6, %v695_v42, %v697_v30  ;;  %1412 = vmatprep.subr.mxu1 %v1017_v43 }
 0x147   :  { %61 = vrot.lane.b32.xlu1 %v2803_v34, %s3778_s22  ;;  %1356 = vmatpush2.msra.mxu0 %v713_v29 }
 0x148   :  { %1413 = vmatpush2.msra.mxu1 %v1016_v48  ;;  %v662_v49 = vpop.permute.xlu0 %661  ;;  %1358 = vmatmul.mubr.f32.vlgmr.msra.gmra.mxu0 %v3057_v46 }
 0x149   :  { %v3067_v51 = vpop.permute.xlu1 %663  ;;  %v674_v55 = vsel %vm669_vm0, %v2681_v44, %v662_v49  ;;  %2324 = vmatprep.mubr.msk.f32.mxu0 %vm1289_vm12, %v2766_v21 }
 0x14a   :  { %364 = vrot.lane.b32.xlu0 %v2936_v4, %s2398_s10  ;;  %v675_v36 = vsel %vm669_vm0, %v662_v49, %v3067_v51 }
 0x14b   :  { %366 = vrot.lane.b32.xlu1 %v2941_v39, %s2398_s10  ;;  %1435 = vmatprep.subr.mxu0 %v675_v36 }
 0x14c   :  { %1436 = vmatpush1.msra.mxu0 %v674_v55  ;;  %v959_v19 = vpop.permute.xlu0 %958 }
 0x14d   :  { %v3079_v57 = vpop.permute.xlu1 %960  ;;  %v973_v44 = vsel %vm970_vm10, %v2924_v26, %v959_v19 }
 0x14e   :  { %321 = vrot.lane.b32.xlu0 %v2936_v4, %s2399_s15  ;;  %v974_v60 = vsel %vm970_vm10, %v959_v19, %v3079_v57 }
 0x14f   :  { %323 = vrot.lane.b32.xlu1 %v2941_v39, %s2399_s15  ;;  %1414 = vmatprep.subr.mxu1 %v974_v60 }
 0x150   :  { %1415 = vmatpush2.msra.mxu1 %v973_v44  ;;  %v619_v61 = vpop.permute.xlu0 %618 }
 0x151   :  { %v3089_v63 = vpop.permute.xlu1 %620  ;;  %v631_v31 = vsel %vm626_vm1, %v2700_v53, %v619_v61 }
 0x152   :  { %278 = vrot.lane.b32.xlu0 %v2936_v4, %s2400_s16  ;;  %v632_v26 = vsel %vm626_vm1, %v619_v61, %v3089_v63 }
 0x153   :  { %280 = vrot.lane.b32.xlu1 %v2941_v39, %s2400_s16  ;;  %1437 = vmatprep.subr.mxu0 %v632_v26 }
 0x154   :  { %1438 = vmatpush1.msra.mxu0 %v631_v31  ;;  %v916_v6 = vpop.permute.xlu0 %915 }
 0x155   :  { %v3099_v7 = vpop.permute.xlu1 %917  ;;  %v930_v1 = vsel %vm927_vm11, %v2953_v47, %v916_v6 }
 0x156   :  { %1048 = vrot.lane.b32.xlu0 %v2796_v32, %s3779_s1  ;;  %v931_v53 = vsel %vm927_vm11, %v916_v6, %v3099_v7 }
 0x157   :  { %1050 = vrot.lane.b32.xlu1 %v2803_v34, %s3779_s1  ;;  %1416 = vmatprep.subr.mxu1 %v931_v53 }
 0x158   :  { %1417 = vmatpush2.msra.mxu1 %v930_v1  ;;  %v576_v52 = vpop.permute.xlu0 %575 }
 0x159   :  { %v3109_v10 = vpop.permute.xlu1 %577  ;;  %v588_v11 = vsel %vm583_vm2, %v2723_v62, %v576_v52 }
 0x15a   :  { %235 = vrot.lane.b32.xlu0 %v2936_v4, %s2401_s17  ;;  %v589_v47 = vsel %vm583_vm2, %v576_v52, %v3109_v10 }
 0x15b   :  { %237 = vrot.lane.b32.xlu1 %v2941_v39, %s2401_s17  ;;  %1439 = vmatprep.subr.mxu0 %v589_v47 }
 0x15c   :  { %1440 = vmatpush1.msra.mxu0 %v588_v11  ;;  %v873_v13 = vpop.permute.xlu0 %872 }
 0x15d   :  { %v3119_v59 = vpop.permute.xlu1 %874  ;;  %v887_v2 = vsel %vm884_vm13, %v2976_v58, %v873_v13 }
 0x15e   :  { %1005 = vrot.lane.b32.xlu0 %v2796_v32, %s2407_s23  ;;  %v888_v62 = vsel %vm884_vm13, %v873_v13, %v3119_v59  ;;  %v2415_v13 = vmov 0  }
 0x15f   :  { %1007 = vrot.lane.b32.xlu1 %v2803_v34, %s2407_s23  ;;  %1418 = vmatprep.subr.mxu1 %v888_v62 }
 0x160   :  { %1419 = vmatpush2.msra.mxu1 %v887_v2  ;;  %v533_v15 = vpop.permute.xlu0 %532  ;;  %2388 = vset.pattern.permute.xlu0 %v2415_v13 }
 0x161   :  { %v3129_v16 = vpop.permute.xlu1 %534  ;;  %v545_v9 = vsel %vm540_vm3, %v2742_v12, %v533_v15 }
 0x162   :  { %192 = vrot.lane.b32.xlu0 %v2936_v4, %s2402_s18  ;;  %v546_v58 = vsel %vm540_vm3, %v533_v15, %v3129_v16 }
 0x163   :  { %194 = vrot.lane.b32.xlu1 %v2941_v39, %s2402_s18  ;;  %1441 = vmatprep.subr.mxu0 %v546_v58 }
 0x164   :  { %1442 = vmatpush1.msra.mxu0 %v545_v9  ;;  %v830_v20 = vpop.permute.xlu0 %829 }
 0x165   :  { %v3139_v24 = vpop.permute.xlu1 %831  ;;  %v844_v27 = vsel %vm3775_vm14, %v2995_v8, %v830_v20 }
 0x166   :  { %962 = vrot.lane.b32.xlu0 %v2796_v32, %s2408_s24  ;;  %v845_v12 = vsel %vm3775_vm14, %v830_v20, %v3139_v24 }
 0x167   :  { %964 = vrot.lane.b32.xlu1 %v2803_v34, %s2408_s24  ;;  %1420 = vmatprep.subr.mxu1 %v845_v12 }
 0x168   :  { %1421 = vmatpush2.msra.mxu1 %v844_v27  ;;  %v490_v28 = vpop.permute.xlu0 %489 }
 0x169   :  { %v3149_v30 = vpop.permute.xlu1 %491  ;;  %v502_v35 = vsel %vm497_vm4, %v2772_v22, %v490_v28 }
 0x16a   :  { %149 = vrot.lane.b32.xlu0 %v2936_v4, %s3776_s25  ;;  %v503_v8 = vsel %vm497_vm4, %v490_v28, %v3149_v30 }
 0x16b   :  { %151 = vrot.lane.b32.xlu1 %v2941_v39, %s3776_s25  ;;  %1443 = vmatprep.subr.mxu0 %v503_v8 }
 0x16c   :  { %1444 = vmatpush1.msra.mxu0 %v502_v35  ;;  %v787_v37 = vpop.permute.xlu0 %786 }
 0x16d   :  { %v3159_v38 = vpop.permute.xlu1 %788  ;;  %v801_v42 = vsel %vm3774_vm15, %v3010_v3, %v787_v37 }
 0x16e   :  { %919 = vrot.lane.b32.xlu0 %v2796_v32, %s2409_s26  ;;  %v802_v22 = vsel %vm3774_vm15, %v787_v37, %v3159_v38  ;;  %vm3780_vm15 = vcmask 850944  }
 0x16f   :  { %921 = vrot.lane.b32.xlu1 %v2803_v34, %s2409_s26  ;;  %1422 = vmatprep.subr.mxu1 %v802_v22  ;;  %vm3781_vm14 = vmmov %vm3780_vm15 }
 0x170   :  { %1423 = vmatpush2.msra.mxu1 %v801_v42  ;;  %v447_v43 = vpop.permute.xlu0 %446 }
 0x171   :  { %v3169_v29 = vpop.permute.xlu1 %448  ;;  %v459_v48 = vsel %vm454_vm5, %v2798_v33, %v447_v43 }
 0x172   :  { %106 = vrot.lane.b32.xlu0 %v2936_v4, %s3777_s28  ;;  %v460_v3 = vsel %vm454_vm5, %v447_v43, %v3169_v29 }
 0x173   :  { %108 = vrot.lane.b32.xlu1 %v2941_v39, %s3777_s28  ;;  %1445 = vmatprep.subr.mxu0 %v460_v3 }
 0x174   :  { %1446 = vmatpush1.msra.mxu0 %v459_v48  ;;  %v744_v49 = vpop.permute.xlu0 %743 }
 0x175   :  { %v3179_v55 = vpop.permute.xlu1 %745  ;;  %v758_v36 = vsel %vm755_vm8, %v3019_v17, %v744_v49 }
 0x176   :  { %876 = vrot.lane.b32.xlu0 %v2796_v32, %s2410_s27  ;;  %v759_v33 = vsel %vm755_vm8, %v744_v49, %v3179_v55 }
 0x177   :  { %878 = vrot.lane.b32.xlu1 %v2803_v34, %s2410_s27  ;;  %1424 = vmatprep.subr.mxu1 %v759_v33 }
 0x178   :  { %1425 = vmatpush2.msra.mxu1 %v758_v36  ;;  %v404_v19 = vpop.permute.xlu0 %403 }
 0x179   :  { %v3189_v44 = vpop.permute.xlu1 %405  ;;  %v416_v60 = vsel %vm3780_vm15, %v2826_v45, %v404_v19 }
 0x17a   :  { %63 = vrot.lane.b32.xlu0 %v2936_v4, %s3778_s22  ;;  %v417_v17 = vsel %vm3781_vm14, %v404_v19, %v3189_v44  ;;  %vm3782_vm14 = vcmask 859136  }
 0x17b   :  { %65 = vrot.lane.b32.xlu1 %v2941_v39, %s3778_s22  ;;  %1447 = vmatprep.subr.mxu0 %v417_v17  ;;  %vm3783_vm15 = vmmov %vm3782_vm14 }
 0x17c   :  { %1448 = vmatpush1.msra.mxu0 %v416_v60  ;;  %v701_v61 = vpop.permute.xlu0 %700 }
 0x17d   :  { %v3199_v31 = vpop.permute.xlu1 %702  ;;  %v715_v26 = vsel %vm712_vm6, %v3042_v50, %v701_v61 }
 0x17e   :  { %833 = vrot.lane.b32.xlu0 %v2796_v32, %s2411_s11  ;;  %v716_v45 = vsel %vm712_vm6, %v701_v61, %v3199_v31 }
 0x17f   :  { %835 = vrot.lane.b32.xlu1 %v2803_v34, %s2411_s11  ;;  %1426 = vmatprep.subr.mxu1 %v716_v45 }
 0x180   :  { %1427 = vmatpush2.msra.mxu1 %v715_v26  ;;  %v361_v6 = vpop.permute.xlu0 %360 }
 0x181   :  { %v3209_v1 = vpop.permute.xlu1 %362  ;;  %v373_v53 = vsel %vm3782_vm14, %v2845_v56, %v361_v6  ;;  %1429 = vmatmul.mubr.f32.vlgmr.msra.gmra.mxu1 %v3057_v46  ;;  %vm3784_vm14 = vcmask 867328  }
 0x182   :  { %790 = vrot.lane.b32.xlu0 %v2796_v32, %s2412_s12  ;;  %v374_v50 = vsel %vm3783_vm15, %v361_v6, %v3209_v1  ;;  %2325 = vmatprep.mubr.msk.f32.mxu1 %vm1289_vm12, %v2766_v21  ;;  %vm3785_vm15 = vmmov %vm3784_vm14 }
 0x183   :  { %792 = vrot.lane.b32.xlu1 %v2803_v34, %s2412_s12  ;;  %1449 = vmatprep.subr.mxu0 %v374_v50  ;;  %v1283_v50 = vld [vmem:[%s3752_s2] sm:$0xff] }
 0x184   :  { %1450 = vmatpush1.msra.mxu0 %v373_v53  ;;  %v666_v52 = vpop.permute.xlu0 %665 }
 0x185   :  { %v668_v11 = vpop.permute.xlu1 %667  ;;  %v676_v56 = vsel %vm669_vm0, %v3067_v51, %v666_v52 }
 0x186   :  { %747 = vrot.lane.b32.xlu0 %v2796_v32, %s2413_s13  ;;  %v677_v47 = vsel %vm669_vm0, %v666_v52, %v668_v11  ;;  %vm3786_vm0 = vcmask 875520  }
 0x187   :  { %749 = vrot.lane.b32.xlu1 %v2803_v34, %s2413_s13  ;;  %1506 = vmatprep.subr.mxu1 %v677_v47 }
 0x188   :  { %1507 = vmatpush1.msra.mxu1 %v676_v56  ;;  %v318_v21 = vpop.permute.xlu0 %317 }
 0x189   :  { %v3229_v2 = vpop.permute.xlu1 %319  ;;  %v330_v62 = vsel %vm3784_vm14, %v2861_v41, %v318_v21  ;;  %vm3787_vm14 = vmmov %vm3786_vm0 }
 0x18a   :  { %1052 = vrot.lane.b32.xlu0 %v2936_v4, %s3779_s1  ;;  %v331_v51 = vsel %vm3785_vm15, %v318_v21, %v3229_v2 }
 0x18b   :  { %1054 = vrot.lane.b32.xlu1 %v2941_v39, %s3779_s1  ;;  %1451 = vmatprep.subr.mxu0 %v331_v51 }
 0x18c   :  { %1452 = vmatpush1.msra.mxu0 %v330_v62  ;;  %v623_v15 = vpop.permute.xlu0 %622 }
 0x18d   :  { %v625_v9 = vpop.permute.xlu1 %624  ;;  %v633_v58 = vsel %vm626_vm1, %v3089_v63, %v623_v15 }
 0x18e   :  { %704 = vrot.lane.b32.xlu0 %v2796_v32, %s2414_s20  ;;  %v634_v41 = vsel %vm626_vm1, %v623_v15, %v625_v9  ;;  %vm3788_vm1 = vcmask 883712  }
 0x18f   :  { %706 = vrot.lane.b32.xlu1 %v2803_v34, %s2414_s20  ;;  %1508 = vmatprep.subr.mxu1 %v634_v41  ;;  %vm3789_vm15 = vmmov %vm3788_vm1 }
 0x190   :  { %1509 = vmatpush1.msra.mxu1 %v633_v58  ;;  %v275_v20 = vpop.permute.xlu0 %274 }
 0x191   :  { %v3246_v27 = vpop.permute.xlu1 %276  ;;  %v287_v12 = vsel %vm3786_vm0, %v2872_v0, %v275_v20 }
 0x192   :  { %1009 = vrot.lane.b32.xlu0 %v2936_v4, %s2407_s23  ;;  %v288_v63 = vsel %vm3787_vm14, %v275_v20, %v3246_v27  ;;  %vm3792_vm14 = vcmask 1022976   ;;  %v2389_v20 = vld [vmem:[%s3750_s0 + $0x20] sm:$0xff] }
 0x193   :  { %1011 = vrot.lane.b32.xlu1 %v2941_v39, %s2407_s23  ;;  %1453 = vmatprep.subr.mxu0 %v288_v63 }
 0x194   :  { %1454 = vmatpush1.msra.mxu0 %v287_v12  ;;  %v580_v34 = vpop.permute.xlu0 %579 }
 0x195   :  { %v582_v28 = vpop.permute.xlu1 %581  ;;  %v590_v35 = vsel %vm583_vm2, %v3109_v10, %v580_v34 }
 0x196   :  { %966 = vrot.lane.b32.xlu0 %v2936_v4, %s2408_s24  ;;  %v591_v0 = vsel %vm583_vm2, %v580_v34, %v582_v28  ;;  %vm3790_vm2 = vcmask 1014784  }
 0x197   :  { %968 = vrot.lane.b32.xlu1 %v2941_v39, %s2408_s24  ;;  %1510 = vmatprep.subr.mxu1 %v591_v0  ;;  %vm3791_vm0 = vmmov %vm3790_vm2 }
 0x198   :  { %1511 = vmatpush1.msra.mxu1 %v590_v35  ;;  %v232_v8 = vpop.permute.xlu0 %231 }
 0x199   :  { %v3263_v37 = vpop.permute.xlu1 %233  ;;  %v244_v42 = vsel %vm3788_vm1, %v2891_v14, %v232_v8  ;;  %vm3793_vm1 = vmmov %vm3792_vm14 }
 0x19a   :  { %923 = vrot.lane.b32.xlu0 %v2936_v4, %s2409_s26  ;;  %v245_v10 = vsel %vm3789_vm15, %v232_v8, %v3263_v37  ;;  %vm3794_vm15 = vcmask 1031168  }
 0x19b   :  { %925 = vrot.lane.b32.xlu1 %v2941_v39, %s2409_s26  ;;  %1455 = vmatprep.subr.mxu0 %v245_v10 }
 0x19c   :  { %1456 = vmatpush1.msra.mxu0 %v244_v42  ;;  %v537_v22 = vpop.permute.xlu0 %536 }
 0x19d   :  { %v539_v43 = vpop.permute.xlu1 %538  ;;  %v547_v48 = vsel %vm540_vm3, %v3129_v16, %v537_v22 }
 0x19e   :  { %880 = vrot.lane.b32.xlu0 %v2936_v4, %s2410_s27  ;;  %v548_v14 = vsel %vm540_vm3, %v537_v22, %v539_v43 }
 0x19f   :  { %882 = vrot.lane.b32.xlu1 %v2941_v39, %s2410_s27  ;;  %1512 = vmatprep.subr.mxu1 %v548_v14 }
 0x1a0   :  { %1513 = vmatpush1.msra.mxu1 %v547_v48  ;;  %v189_v3 = vpop.permute.xlu0 %188 }
 0x1a1   :  { %v3280_v49 = vpop.permute.xlu1 %190  ;;  %v201_v36 = vsel %vm3790_vm2, %v2914_v25, %v189_v3  ;;  %vm3795_vm2 = vmmov %vm3794_vm15 }
 0x1a2   :  { %837 = vrot.lane.b32.xlu0 %v2936_v4, %s2411_s11  ;;  %v202_v16 = vsel %vm3791_vm0, %v189_v3, %v3280_v49  ;;  %vm3796_vm0 = vcmask 850944  }
 0x1a3   :  { %839 = vrot.lane.b32.xlu1 %v2941_v39, %s2411_s11  ;;  %1457 = vmatprep.subr.mxu0 %v202_v16 }
 0x1a4   :  { %1458 = vmatpush1.msra.mxu0 %v201_v36  ;;  %v494_v33 = vpop.permute.xlu0 %493 }
 0x1a5   :  { %v496_v19 = vpop.permute.xlu1 %495  ;;  %v504_v60 = vsel %vm497_vm4, %v3149_v30, %v494_v33 }
 0x1a6   :  { %794 = vrot.lane.b32.xlu0 %v2936_v4, %s2412_s12  ;;  %v505_v25 = vsel %vm497_vm4, %v494_v33, %v496_v19 }
 0x1a7   :  { %796 = vrot.lane.b32.xlu1 %v2941_v39, %s2412_s12  ;;  %1514 = vmatprep.subr.mxu1 %v505_v25 }
 0x1a8   :  { %1515 = vmatpush1.msra.mxu1 %v504_v60  ;;  %v146_v17 = vpop.permute.xlu0 %145 }
 0x1a9   :  { %v3297_v61 = vpop.permute.xlu1 %147  ;;  %v158_v26 = vsel %vm3792_vm14, %v2943_v40, %v146_v17  ;;  %vm3797_vm14 = vmmov %vm3796_vm0 }
 0x1aa   :  { %751 = vrot.lane.b32.xlu0 %v2936_v4, %s2413_s13  ;;  %v159_v30 = vsel %vm3793_vm1, %v146_v17, %v3297_v61  ;;  %vm3798_vm1 = vcmask 1039360  }
 0x1ab   :  { %753 = vrot.lane.b32.xlu1 %v2941_v39, %s2413_s13  ;;  %1459 = vmatprep.subr.mxu0 %v159_v30 }
 0x1ac   :  { %1460 = vmatpush1.msra.mxu0 %v158_v26  ;;  %v451_v45 = vpop.permute.xlu0 %450 }
 0x1ad   :  { %v453_v6 = vpop.permute.xlu1 %452  ;;  %v461_v53 = vsel %vm454_vm5, %v3169_v29, %v451_v45 }
 0x1ae   :  { %708 = vrot.lane.b32.xlu0 %v2936_v4, %s2414_s20  ;;  %v462_v40 = vsel %vm454_vm5, %v451_v45, %v453_v6 }
 0x1af   :  { %710 = vrot.lane.b32.xlu1 %v2941_v39, %s2414_s20  ;;  %1516 = vmatprep.subr.mxu1 %v462_v40 }
 0x1b0   :  { %1517 = vmatpush1.msra.mxu1 %v461_v53  ;;  %v103_v52 = vpop.permute.xlu0 %102 }
 0x1b1   :  { %v3317_v11 = vpop.permute.xlu1 %104  ;;  %v115_v29 = vsel %vm3794_vm15, %v2966_v54, %v103_v52  ;;  %vm3799_vm15 = vmmov %vm3798_vm1 }
 0x1b2   :  { %v116_v56 = vsel %vm3795_vm2, %v103_v52, %v3317_v11  ;;  %1286 = vperm.xlu0 %2388, %v1283_v50   ;;  %vm3800_vm2 = vcmask 859136  }
 0x1b3   :  { %1461 = vmatprep.subr.mxu0 %v116_v56 }
 0x1b4   :  { %1462 = vmatpush1.msra.mxu0 %v115_v29  ;;  %v408_v47 = vpop.permute.xlu0 %407 }
 0x1b5   :  { %v410_v39 = vpop.permute.xlu1 %409  ;;  %v418_v21 = vsel %vm3796_vm0, %v3189_v44, %v408_v47  ;;  %vm3801_vm0 = vmmov %vm3800_vm2 }
 0x1b6   :  { %v419_v13 = vsel %vm3797_vm14, %v408_v47, %v410_v39  ;;  %vm3802_vm14 = vcmask 867328  }
 0x1b7   :  { %1518 = vmatprep.subr.mxu1 %v419_v13 }
 0x1b8   :  { %1519 = vmatpush1.msra.mxu1 %v418_v21  ;;  %v60_v62 = vpop.permute.xlu0 %59 }
 0x1b9   :  { %v3326_v51 = vpop.permute.xlu1 %61  ;;  %v72_v54 = vsel %vm3798_vm1, %v2985_v5, %v60_v62  ;;  %vm3803_vm1 = vmmov %vm3802_vm14 }
 0x1ba   :  { %v73_v15 = vsel %vm3799_vm15, %v60_v62, %v3326_v51  ;;  %vm3804_vm15 = vcmask 875520  }
 0x1bb   :  { %1463 = vmatprep.subr.mxu0 %v73_v15 }
 0x1bc   :  { %1464 = vmatpush1.msra.mxu0 %v72_v54  ;;  %v365_v9 = vpop.permute.xlu0 %364 }
 0x1bd   :  { %v367_v58 = vpop.permute.xlu1 %366  ;;  %v375_v44 = vsel %vm3800_vm2, %v3209_v1, %v365_v9  ;;  %1465 = vmatprep.subr.mxu0 %v2796_v32  ;;  %vm3805_vm2 = vmmov %vm3804_vm15 }
 0x1be   :  { %v376_v41 = vsel %vm3801_vm0, %v365_v9, %v367_v58  ;;  %1466 = vmatpush1.msra.mxu0 %v2389_v20  ;;  %vm3806_vm0 = vcmask 883712   ;;  %v2390_v9 = vld [vmem:[%s3750_s0 + $0x30] sm:$0xff] }
 0x1bf   :  { %1520 = vmatprep.subr.mxu1 %v376_v41 }
 0x1c0   :  { %1521 = vmatpush1.msra.mxu1 %v375_v44  ;;  %v322_v5 = vpop.permute.xlu0 %321 }
 0x1c1   :  { %v324_v12 = vpop.permute.xlu1 %323  ;;  %v332_v63 = vsel %vm3802_vm14, %v3229_v2, %v322_v5  ;;  %vm3807_vm14 = vmmov %vm3806_vm0 }
 0x1c2   :  { %v333_v34 = vsel %vm3803_vm1, %v322_v5, %v324_v12  ;;  %vm3808_vm1 = vcmask 1014784  }
 0x1c3   :  { %1522 = vmatprep.subr.mxu1 %v333_v34 }
 0x1c4   :  { %1523 = vmatpush1.msra.mxu1 %v332_v63  ;;  %v279_v1 = vpop.permute.xlu0 %278 }
 0x1c5   :  { %v281_v32 = vpop.permute.xlu1 %280  ;;  %v289_v28 = vsel %vm3804_vm15, %v3246_v27, %v279_v1  ;;  %vm3809_vm15 = vmmov %vm3808_vm1 }
 0x1c6   :  { %v290_v35 = vsel %vm3805_vm2, %v279_v1, %v281_v32  ;;  %vm3810_vm2 = vcmask 1022976  }
 0x1c7   :  { %1524 = vmatprep.subr.mxu1 %v290_v35 }
 0x1c8   :  { %1525 = vmatpush1.msra.mxu1 %v289_v28  ;;  %v1049_v0 = vpop.permute.xlu0 %1048 }
 0x1c9   :  { %v3345_v8 = vpop.permute.xlu1 %1050  ;;  %v1061_v42 = vsel %vm1056_vm7, %v3027_v23, %v1049_v0 }
 0x1ca   :  { %v1062_v2 = vsel %vm1056_vm7, %v1049_v0, %v3345_v8 }
 0x1cb   :  { %1481 = vmatprep.subr.mxu0 %v1062_v2 }
 0x1cc   :  { %1482 = vmatpush2.msra.mxu0 %v1061_v42  ;;  %v236_v10 = vpop.permute.xlu0 %235 }
 0x1cd   :  { %v238_v22 = vpop.permute.xlu1 %237  ;;  %v246_v27 = vsel %vm3806_vm0, %v3263_v37, %v236_v10  ;;  %vm3811_vm0 = vmmov %vm3810_vm2 }
 0x1ce   :  { %v247_v43 = vsel %vm3807_vm14, %v236_v10, %v238_v22  ;;  %vm3812_vm14 = vcmask 1031168  }
 0x1cf   :  { %1526 = vmatprep.subr.mxu1 %v247_v43 }
 0x1d0   :  { %1527 = vmatpush1.msra.mxu1 %v246_v27  ;;  %v1006_v48 = vpop.permute.xlu0 %1005 }
 0x1d1   :  { %v3354_v14 = vpop.permute.xlu1 %1007  ;;  %v1018_v23 = vsel %vm1013_vm9, %v3050_v18, %v1006_v48 }
 0x1d2   :  { %v1019_v3 = vsel %vm1013_vm9, %v1006_v48, %v3354_v14 }
 0x1d3   :  { %1483 = vmatprep.subr.mxu0 %v1019_v3 }
 0x1d4   :  { %1484 = vmatpush2.msra.mxu0 %v1018_v23  ;;  %v193_v36 = vpop.permute.xlu0 %192 }
 0x1d5   :  { %v195_v16 = vpop.permute.xlu1 %194  ;;  %v203_v37 = vsel %vm3808_vm1, %v3280_v49, %v193_v36  ;;  %vm3813_vm1 = vmmov %vm3812_vm14 }
 0x1d6   :  { %v204_v33 = vsel %vm3809_vm15, %v193_v36, %v195_v16  ;;  %vm3814_vm15 = vcmask 1039360  }
 0x1d7   :  { %1528 = vmatprep.subr.mxu1 %v204_v33 }
 0x1d8   :  { %1529 = vmatpush1.msra.mxu1 %v203_v37  ;;  %v963_v19 = vpop.permute.xlu0 %962 }
 0x1d9   :  { %v3363_v60 = vpop.permute.xlu1 %964  ;;  %v975_v18 = vsel %vm970_vm10, %v3079_v57, %v963_v19 }
 0x1da   :  { %v976_v25 = vsel %vm970_vm10, %v963_v19, %v3363_v60 }
 0x1db   :  { %1485 = vmatprep.subr.mxu0 %v976_v25 }
 0x1dc   :  { %1486 = vmatpush2.msra.mxu0 %v975_v18  ;;  %v150_v17 = vpop.permute.xlu0 %149 }
 0x1dd   :  { %v152_v26 = vpop.permute.xlu1 %151  ;;  %v160_v49 = vsel %vm3810_vm2, %v3297_v61, %v150_v17  ;;  %vm3815_vm2 = vmmov %vm3814_vm15 }
 0x1de   :  { %v161_v30 = vsel %vm3811_vm0, %v150_v17, %v152_v26  ;;  %vm3816_vm0 = vcmask 523264  }
 0x1df   :  { %1530 = vmatprep.subr.mxu1 %v161_v30 }
 0x1e0   :  { %1531 = vmatpush1.msra.mxu1 %v160_v49  ;;  %v920_v45 = vpop.permute.xlu0 %919 }
 0x1e1   :  { %v3372_v6 = vpop.permute.xlu1 %921  ;;  %v932_v57 = vsel %vm927_vm11, %v3099_v7, %v920_v45 }
 0x1e2   :  { %v933_v53 = vsel %vm927_vm11, %v920_v45, %v3372_v6 }
 0x1e3   :  { %1487 = vmatprep.subr.mxu0 %v933_v53 }
 0x1e4   :  { %1488 = vmatpush2.msra.mxu0 %v932_v57  ;;  %v107_v40 = vpop.permute.xlu0 %106 }
 0x1e5   :  { %v117_v50 = vsel %vm3812_vm14, %v3317_v11, %v107_v40  ;;  %v109_v61 = vpop.permute.xlu1 %108  ;;  %vm3817_vm14 = vmmov %vm3816_vm0 }
 0x1e6   :  { %v118_v52 = vsel %vm3813_vm1, %v107_v40, %v109_v61  ;;  %vm3818_vm1 = vcmask 531456   ;;  %v1587_v61 = vlaneseq }
 0x1e7   :  { %1532 = vmatprep.subr.mxu1 %v118_v52 }
 0x1e8   :  { %1533 = vmatpush1.msra.mxu1 %v117_v50  ;;  %v877_v29 = vpop.permute.xlu0 %876  ;;  %v3431_v52 = vshrl.u32 %v1587_v61, 7 }
 0x1e9   :  { %v889_v56 = vsel %vm884_vm13, %v3119_v59, %v877_v29  ;;  %v3383_v47 = vpop.permute.xlu1 %878 }
 0x1ea   :  { %v890_v7 = vsel %vm884_vm13, %v877_v29, %v3383_v47 }
 0x1eb   :  { %1489 = vmatprep.subr.mxu0 %v890_v7 }
 0x1ec   :  { %1490 = vmatpush2.msra.mxu0 %v889_v56  ;;  %v64_v39 = vpop.permute.xlu0 %63  ;;  %v1589_v56 = vsub.s32 0, %v3431_v52 }
 0x1ed   :  { %v74_v11 = vsel %vm3814_vm15, %v3326_v51, %v64_v39  ;;  %v66_v21 = vpop.permute.xlu1 %65  ;;  %vm3819_vm15 = vmmov %vm3818_vm1 }
 0x1ee   :  { %v75_v13 = vsel %vm3815_vm2, %v64_v39, %v66_v21  ;;  %v3438_v39 = vld [vmem:[%s3753_s3] sm:$0xff] }
 0x1ef   :  { %1534 = vmatprep.subr.mxu1 %v75_v13 }
 0x1f0   :  { %1535 = vmatpush1.msra.mxu1 %v74_v11  ;;  %v834_v62 = vpop.permute.xlu0 %833 }
 0x1f1   :  { %v846_v59 = vsel %vm3816_vm0, %v3139_v24, %v834_v62  ;;  %v836_v54 = vpop.permute.xlu1 %835  ;;  %1536 = vmatprep.subr.mxu1 %v2936_v4 }
 0x1f2   :  { %v847_v15 = vsel %vm3817_vm14, %v834_v62, %v836_v54  ;;  %1537 = vmatpush1.msra.mxu1 %v2390_v9 }
 0x1f3   :  { %1491 = vmatprep.subr.mxu0 %v847_v15 }
 0x1f4   :  { %1492 = vmatpush2.msra.mxu0 %v846_v59  ;;  %v791_v51 = vpop.permute.xlu0 %790 }
 0x1f5   :  { %v803_v58 = vsel %vm3818_vm1, %v3159_v38, %v791_v51  ;;  %v793_v44 = vpop.permute.xlu1 %792 }
 0x1f6   :  { %v804_v41 = vsel %vm3819_vm15, %v791_v51, %v793_v44  ;;  %v1597_v51 = vsub.s32 2, %v3431_v52 }
 0x1f7   :  { %1493 = vmatprep.subr.mxu0 %v804_v41 }
 0x1f8   :  { %1494 = vmatpush2.msra.mxu0 %v803_v58  ;;  %v748_v24 = vpop.permute.xlu0 %747  ;;  %v1598_v41 = vrot.slane %v3438_v39, %v1597_v51 }
 0x1f9   :  { %v760_v4 = vsel %vm755_vm8, %v3179_v55, %v748_v24  ;;  %v750_v20 = vpop.permute.xlu1 %749 }
 0x1fa   :  { %v761_v5 = vsel %vm755_vm8, %v748_v24, %v750_v20 }
 0x1fb   :  { %1495 = vmatprep.subr.mxu0 %v761_v5  ;;  %v1601_v5 = vsub.s32 3, %v3431_v52 }
 0x1fc   :  { %1496 = vmatpush2.msra.mxu0 %v760_v4  ;;  %v1053_v12 = vpop.permute.xlu0 %1052 }
 0x1fd   :  { %v1063_v63 = vsel %vm1056_vm7, %v3345_v8, %v1053_v12  ;;  %v1055_v34 = vpop.permute.xlu1 %1054 }
 0x1fe   :  { %v1064_v38 = vsel %vm1056_vm7, %v1053_v12, %v1055_v34  ;;  %vm3820_vm7 = vmmov %vm3816_vm0  ;;  %v1602_v34 = vrot.slane %v3438_v39, %v1601_v5 }
 0x1ff   :  { %1552 = vmatprep.subr.mxu1 %v1064_v38 }
 0x200   :  { %1553 = vmatpush2.msra.mxu1 %v1063_v63  ;;  %v705_v1 = vpop.permute.xlu0 %704 }
 0x201   :  { %v717_v32 = vsel %vm712_vm6, %v3199_v31, %v705_v1  ;;  %v707_v28 = vpop.permute.xlu1 %706 }
 0x202   :  { %v718_v55 = vsel %vm712_vm6, %v705_v1, %v707_v28 }
 0x203   :  { %1497 = vmatprep.subr.mxu0 %v718_v55 }
 0x204   :  { %1498 = vmatpush2.msra.mxu0 %v717_v32  ;;  %v1010_v35 = vpop.permute.xlu0 %1009 }
 0x205   :  { %v1020_v0 = vsel %vm1013_vm9, %v3354_v14, %v1010_v35  ;;  %1500 = vmatmul.mubr.f32.vlgmr.msra.gmra.mxu0 %v3057_v46  ;;  %v1012_v8 = vpop.permute.xlu1 %1011 }
 0x206   :  { %v1021_v42 = vsel %vm1013_vm9, %v1010_v35, %v1012_v8  ;;  %vm3821_vm9 = vmmov %vm3816_vm0  ;;  %vm3828_vm0 = vcmask 883712  }
 0x207   :  { %1554 = vmatprep.subr.mxu1 %v1021_v42  ;;  %vm3831_vm15 = vmmov %vm3828_vm0 }
 0x208   :  { %1555 = vmatpush2.msra.mxu1 %v1020_v0  ;;  %v967_v2 = vpop.permute.xlu0 %966  ;;  %v1359_v29 = vpop.f32.mrf.mxu0 }
 0x209   :  { %v977_v31 = vsel %vm970_vm10, %v3363_v60, %v967_v2  ;;  %v969_v10 = vpop.permute.xlu1 %968 }
 0x20a   :  { %v978_v22 = vsel %vm970_vm10, %v967_v2, %v969_v10  ;;  %vm3822_vm10 = vmmov %vm3818_vm1  ;;  %v1361_v7 = vpop.f32.mrf.mxu0 }
 0x20b   :  { %1556 = vmatprep.subr.mxu1 %v978_v22 }
 0x20c   :  { %1557 = vmatpush2.msra.mxu1 %v977_v31  ;;  %v924_v27 = vpop.permute.xlu0 %923  ;;  %v1605_v31 = vsub.s32 4, %v3431_v52 }
 0x20d   :  { %v934_v43 = vsel %vm927_vm11, %v3372_v6, %v924_v27  ;;  %v926_v48 = vpop.permute.xlu1 %925 }
 0x20e   :  { %v935_v14 = vsel %vm927_vm11, %v924_v27, %v926_v48  ;;  %vm3823_vm11 = vmmov %vm3818_vm1 }
 0x20f   :  { %1558 = vmatprep.subr.mxu1 %v935_v14  ;;  %v1606_v14 = vrot.slane %v3438_v39, %v1605_v31 }
 0x210   :  { %1559 = vmatpush2.msra.mxu1 %v934_v43  ;;  %v881_v23 = vpop.permute.xlu0 %880 }
 0x211   :  { %v891_v3 = vsel %vm884_vm13, %v3383_v47, %v881_v23  ;;  %v883_v36 = vpop.permute.xlu1 %882  ;;  %v1593_v47 = vsub.s32 1, %v3431_v52 }
 0x212   :  { %v892_v16 = vsel %vm884_vm13, %v881_v23, %v883_v36  ;;  %vm3826_vm13 = vcmask 875520  }
 0x213   :  { %1560 = vmatprep.subr.mxu1 %v892_v16  ;;  %v1594_v62 = vrot.slane %v3438_v39, %v1593_v47  ;;  %vm3827_vm2 = vmmov %vm3826_vm13 }
 0x214   :  { %1561 = vmatpush2.msra.mxu1 %v891_v3  ;;  %v838_v37 = vpop.permute.xlu0 %837 }
 0x215   :  { %v848_v33 = vsel %vm3820_vm7, %v836_v54, %v838_v37  ;;  %v840_v19 = vpop.permute.xlu1 %839  ;;  %vm3832_vm7 = vcmask 1031168  }
 0x216   :  { %v849_v60 = vsel %vm3821_vm9, %v838_v37, %v840_v19  ;;  %vm3833_vm9 = vmmov %vm3832_vm7 }
 0x217   :  { %1562 = vmatprep.subr.mxu1 %v849_v60 }
 0x218   :  { %1563 = vmatpush2.msra.mxu1 %v848_v33  ;;  %v795_v18 = vpop.permute.xlu0 %794 }
 0x219   :  { %v805_v25 = vsel %vm3822_vm10, %v793_v44, %v795_v18  ;;  %v797_v17 = vpop.permute.xlu1 %796  ;;  %vm3834_vm10 = vmmov %vm3827_vm2 }
 0x21a   :  { %v806_v26 = vsel %vm3823_vm11, %v795_v18, %v797_v17  ;;  %v1609_v18 = vsub.s32 5, %v3431_v52  ;;  %vm3835_vm11 = vmmov %vm3827_vm2 }
 0x21b   :  { %1564 = vmatprep.subr.mxu1 %v806_v26 }
 0x21c   :  { %1565 = vmatpush2.msra.mxu1 %v805_v25  ;;  %v752_v49 = vpop.permute.xlu0 %751  ;;  %v2416_v25 = vmov 0.0   ;;  %v1610_v26 = vrot.slane %v3438_v39, %v1609_v18 }
 0x21d   :  { %v762_v30 = vsel %vm755_vm8, %v750_v20, %v752_v49  ;;  %v754_v45 = vpop.permute.xlu1 %753  ;;  %2083 = vmatprep.mubr.f32.mxu0 %v2416_v25 }
 0x21e   :  { %v763_v6 = vsel %vm755_vm8, %v752_v49, %v754_v45 }
 0x21f   :  { %1566 = vmatprep.subr.mxu1 %v763_v6 }
 0x220   :  { %1567 = vmatpush2.msra.mxu1 %v762_v30  ;;  %v709_v57 = vpop.permute.xlu0 %708 }
 0x221   :  { %v719_v53 = vsel %vm712_vm6, %v707_v28, %v709_v57  ;;  %v711_v40 = vpop.permute.xlu1 %710 }
 0x222   :  { %v720_v50 = vsel %vm712_vm6, %v709_v57, %v711_v40  ;;  %v1613_v57 = vsub.s32 6, %v3431_v52  ;;  %v1617_v40 = vsub.s32 7, %v3431_v52  ;;  %vm3824_vm6 = vcmask 867328  }
 0x223   :  { %1568 = vmatprep.subr.mxu1 %v720_v50  ;;  %vm3825_vm8 = vmmov %vm3824_vm6 }
 0x224   :  { %1569 = vmatpush2.msra.mxu1 %v719_v53  ;;  %v1614_v61 = vrot.slane %v3438_v39, %v1613_v57  ;;  %vm3829_vm14 = vmmov %vm3824_vm6 }
 0x225   :  { %1571 = vmatmul.mubr.f32.vlgmr.msra.gmra.mxu1 %v3057_v46  ;;  %v1590_v46 = vrot.slane %v3438_v39, %v1589_v56  ;;  %v1618_v56 = vrot.slane %v3438_v39, %v1617_v40  ;;  %vm3830_vm1 = vmmov %vm3824_vm6 }
 0x226   :  { %2154 = vmatprep.mubr.f32.mxu1 %v2416_v25 }
 0x22d   :  { %v3440_v11 = vpop.permute.xlu0 %1286 }
 0x22e   :  { %v1360_v21 = vadd.f32 %v1359_v29, %v3440_v11  ;;  %v1362_v13 = vadd.f32 %v1361_v7, %v3440_v11  ;;  %v2010_v7 = vld [vmem:[%s3754_s5] sm:$0xf] }
 0x230   :  { %v1577_v59 = vmax.f32 %v1360_v21, 0.0  ;;  %v1578_v54 = vmax.f32 %v1362_v13, 0.0 }
 0x232   :  { %v3446_v15 = vmul.f32 %v1590_v46, %v1577_v59  ;;  %v3448_v9 = vmul.f32 %v1594_v62, %v1578_v54 }
 0x234   :  { %1911 = vrot.lane.b32.xlu1 %v3448_v9, %s2394_s30  ;;  %1909 = vrot.lane.b32.xlu0 %v3446_v15, %s2394_s30 }
 0x241   :  { %v1430_v58 = vpop.f32.mrf.mxu1 }
 0x242   :  { %v1431_v44 = vadd.f32 %v1430_v58, %v3440_v11 }
 0x243   :  { %v1432_v24 = vpop.f32.mrf.mxu1 }
 0x244   :  { %v1579_v4 = vmax.f32 %v1431_v44, 0.0  ;;  %v1433_v20 = vadd.f32 %v1432_v24, %v3440_v11 }
 0x246   :  { %v3459_v12 = vmul.f32 %v1598_v41, %v1579_v4  ;;  %v1580_v63 = vmax.f32 %v1433_v20, 0.0 }
 0x248   :  { %1913 = vrot.lane.b32.xlu1 %v3459_v12, %s2394_s30  ;;  %1876 = vrot.lane.b32.xlu0 %v3459_v12, %s2395_s7  ;;  %v3466_v38 = vmul.f32 %v1602_v34, %v1580_v63 }
 0x24c   :  { %1874 = vrot.lane.b32.xlu1 %v3448_v9, %s2395_s7  ;;  %1837 = vrot.lane.b32.xlu0 %v3448_v9, %s2396_s8 }
 0x250   :  { %1872 = vrot.lane.b32.xlu1 %v3446_v15, %s2395_s7  ;;  %1915 = vrot.lane.b32.xlu0 %v3466_v38, %s2394_s30 }
 0x254   :  { %1839 = vrot.lane.b32.xlu1 %v3459_v12, %s2396_s8  ;;  %1835 = vrot.lane.b32.xlu0 %v3446_v15, %s2396_s8 }
 0x258   :  { %1802 = vrot.lane.b32.xlu0 %v3459_v12, %s2399_s15 }
 0x2a6   :  { %v1912_v1 = vpop.permute.xlu1 %1911  ;;  %v1910_v32 = vpop.permute.xlu0 %1909 }
 0x2a7   :  { %v1925_v28 = vsel %vm540_vm3, %v1910_v32, %v1912_v1 }
 0x2ba   :  { %v3483_v55 = vpop.permute.xlu1 %1913  ;;  %v3485_v35 = vpop.permute.xlu0 %1876 }
 0x2bb   :  { %v1926_v0 = vsel %vm540_vm3, %v1912_v1, %v3483_v55 }
 0x2bc   :  { %2033 = vmatprep.subr.mxu0 %v1926_v0 }
 0x2bd   :  { %2034 = vmatpush1.msra.mxu0 %v1925_v28 }
 0x2be   :  { %v1875_v8 = vpop.permute.xlu1 %1874  ;;  %v1838_v42 = vpop.permute.xlu0 %1837 }
 0x2bf   :  { %v1889_v2 = vsel %vm497_vm4, %v1875_v8, %v3485_v35 }
 0x2c0   :  { %2035 = vmatprep.subr.mxu0 %v1889_v2 }
 0x2c2   :  { %v1873_v10 = vpop.permute.xlu1 %1872  ;;  %v3492_v22 = vpop.permute.xlu0 %1915 }
 0x2c3   :  { %v1888_v27 = vsel %vm497_vm4, %v1873_v10, %v1875_v8  ;;  %v1927_v46 = vsel %vm540_vm3, %v3483_v55, %v3492_v22 }
 0x2c4   :  { %2036 = vmatpush1.msra.mxu0 %v1888_v27 }
 0x2c5   :  { %v1501_v43 = vpop.f32.mrf.mxu0 }
 0x2c6   :  { %v1502_v48 = vadd.f32 %v1501_v43, %v3440_v11  ;;  %v3497_v23 = vpop.permute.xlu1 %1839  ;;  %v1836_v3 = vpop.permute.xlu0 %1835 }
 0x2c7   :  { %v1851_v36 = vsel %vm454_vm5, %v1836_v3, %v1838_v42  ;;  %v1852_v16 = vsel %vm454_vm5, %v1838_v42, %v3497_v23  ;;  %v1503_v19 = vpop.f32.mrf.mxu0 }
 0x2c8   :  { %v1581_v37 = vmax.f32 %v1502_v48, 0.0  ;;  %2037 = vmatprep.subr.mxu0 %v1852_v16  ;;  %v1504_v60 = vadd.f32 %v1503_v19, %v3440_v11 }
 0x2c9   :  { %2038 = vmatpush1.msra.mxu0 %v1851_v36 }
 0x2ca   :  { %v3502_v33 = vmul.f32 %v1606_v14, %v1581_v37  ;;  %v1582_v17 = vmax.f32 %v1504_v60, 0.0  ;;  %v1803_v39 = vpop.permute.xlu0 %1802 }
 0x2cc   :  { %1880 = vrot.lane.b32.xlu0 %v3502_v33, %s2395_s7  ;;  %1917 = vrot.lane.b32.xlu1 %v3502_v33, %s2394_s30  ;;  %v3561_v30 = vmul.f32 %v1610_v26, %v1582_v17 }
 0x2d0   :  { %1763 = vrot.lane.b32.xlu0 %v3448_v9, %s2400_s16  ;;  %1800 = vrot.lane.b32.xlu1 %v3448_v9, %s2399_s15 }
 0x2d4   :  { %1841 = vrot.lane.b32.xlu0 %v3466_v38, %s2396_s8  ;;  %1878 = vrot.lane.b32.xlu1 %v3466_v38, %s2395_s7 }
 0x2d8   :  { %1761 = vrot.lane.b32.xlu0 %v3446_v15, %s2400_s16  ;;  %1798 = vrot.lane.b32.xlu1 %v3446_v15, %s2399_s15 }
 0x2dc   :  { %1728 = vrot.lane.b32.xlu0 %v3459_v12, %s2401_s17  ;;  %1765 = vrot.lane.b32.xlu1 %v3459_v12, %s2400_s16 }
 0x2e0   :  { %1806 = vrot.lane.b32.xlu0 %v3502_v33, %s2399_s15  ;;  %1843 = vrot.lane.b32.xlu1 %v3502_v33, %s2396_s8 }
 0x2e4   :  { %1689 = vrot.lane.b32.xlu0 %v3448_v9, %s3777_s28  ;;  %1726 = vrot.lane.b32.xlu1 %v3448_v9, %s2401_s17 }
 0x2e5   :  { %v1572_v49 = vpop.f32.mrf.mxu1 }
 0x2e6   :  { %v1573_v6 = vadd.f32 %v1572_v49, %v3440_v11 }
 0x2e7   :  { %v1574_v45 = vpop.f32.mrf.mxu1 }
 0x2e8   :  { %1767 = vrot.lane.b32.xlu0 %v3466_v38, %s2400_s16  ;;  %1804 = vrot.lane.b32.xlu1 %v3466_v38, %s2399_s15  ;;  %v1575_v53 = vadd.f32 %v1574_v45, %v3440_v11  ;;  %v1583_v50 = vmax.f32 %v1573_v6, 0.0 }
 0x2ea   :  { %v1584_v29 = vmax.f32 %v1575_v53, 0.0  ;;  %v3581_v47 = vmul.f32 %v1614_v61, %v1583_v50  ;;  %v3668_v61 = vld [vmem:[%s3755_s4] sm:$0xf] }
 0x2ec   :  { %1687 = vrot.lane.b32.xlu0 %v3446_v15, %s3777_s28  ;;  %1724 = vrot.lane.b32.xlu1 %v3446_v15, %s2401_s17  ;;  %v1634_v52 = vmul.f32 %v1618_v56, %v1584_v29 }
 0x2f0   :  { %1654 = vrot.lane.b32.xlu0 %v3459_v12, %s3778_s22  ;;  %1691 = vrot.lane.b32.xlu1 %v3459_v12, %s3777_s28 }
 0x2f4   :  { %1732 = vrot.lane.b32.xlu0 %v3502_v33, %s2401_s17  ;;  %1769 = vrot.lane.b32.xlu1 %v3502_v33, %s2400_s16 }
 0x2f8   :  { %1693 = vrot.lane.b32.xlu0 %v3466_v38, %s3777_s28  ;;  %1652 = vrot.lane.b32.xlu1 %v3448_v9, %s3778_s22 }
 0x2fc   :  { %1656 = vrot.lane.b32.xlu0 %v3466_v38, %s3778_s22  ;;  %1730 = vrot.lane.b32.xlu1 %v3466_v38, %s2401_s17 }
 0x300   :  { %1919 = vrot.lane.b32.xlu0 %v3561_v30, %s2394_s30  ;;  %1650 = vrot.lane.b32.xlu1 %v3446_v15, %s3778_s22 }
 0x304   :  { %1882 = vrot.lane.b32.xlu0 %v3561_v30, %s2395_s7  ;;  %1695 = vrot.lane.b32.xlu1 %v3502_v33, %s3777_s28 }
 0x308   :  { %1845 = vrot.lane.b32.xlu0 %v3561_v30, %s2396_s8  ;;  %1658 = vrot.lane.b32.xlu1 %v3502_v33, %s3778_s22 }
 0x30c   :  { %1923 = vrot.lane.b32.xlu0 %v1634_v52, %s2394_s30  ;;  %1921 = vrot.lane.b32.xlu1 %v3581_v47, %s2394_s30 }
 0x310   :  { %1810 = vrot.lane.b32.xlu0 %v3581_v47, %s2399_s15  ;;  %1884 = vrot.lane.b32.xlu1 %v3581_v47, %s2395_s7 }
 0x314   :  { %1771 = vrot.lane.b32.xlu0 %v3561_v30, %s2400_s16  ;;  %1847 = vrot.lane.b32.xlu1 %v3581_v47, %s2396_s8 }
 0x318   :  { %1849 = vrot.lane.b32.xlu0 %v1634_v52, %s2396_s8  ;;  %1808 = vrot.lane.b32.xlu1 %v3561_v30, %s2399_s15 }
 0x31c   :  { %1736 = vrot.lane.b32.xlu0 %v3581_v47, %s2401_s17  ;;  %1886 = vrot.lane.b32.xlu1 %v1634_v52, %s2395_s7 }
 0x320   :  { %1697 = vrot.lane.b32.xlu0 %v3561_v30, %s3777_s28  ;;  %1773 = vrot.lane.b32.xlu1 %v3581_v47, %s2400_s16 }
 0x324   :  { %1775 = vrot.lane.b32.xlu0 %v1634_v52, %s2400_s16  ;;  %1734 = vrot.lane.b32.xlu1 %v3561_v30, %s2401_s17 }
 0x328   :  { %1662 = vrot.lane.b32.xlu0 %v3581_v47, %s3778_s22  ;;  %1812 = vrot.lane.b32.xlu1 %v1634_v52, %s2399_s15 }
 0x32c   :  { %1701 = vrot.lane.b32.xlu0 %v1634_v52, %s3777_s28  ;;  %1699 = vrot.lane.b32.xlu1 %v3581_v47, %s3777_s28 }
 0x330   :  { %2013 = vperm.xlu0 %2388, %v2010_v7   ;;  %1660 = vrot.lane.b32.xlu1 %v3561_v30, %s3778_s22 }
 0x334   :  { %1738 = vrot.lane.b32.xlu1 %v1634_v52, %s2401_s17 }
 0x338   :  { %1664 = vrot.lane.b32.xlu1 %v1634_v52, %s3778_s22 }
 0x33e   :  { %v3620_v11 = vpop.permute.xlu0 %1880  ;;  %v3622_v21 = vpop.permute.xlu1 %1917 }
 0x33f   :  { %v1928_v13 = vsel %vm540_vm3, %v3492_v22, %v3622_v21 }
 0x340   :  { %2104 = vmatprep.subr.mxu1 %v1928_v13 }
 0x341   :  { %2105 = vmatpush1.msra.mxu1 %v1927_v46 }
 0x342   :  { %v1764_v62 = vpop.permute.xlu0 %1763  ;;  %v1801_v59 = vpop.permute.xlu1 %1800 }
 0x343   :  { %v1815_v54 = vsel %vm3824_vm6, %v1801_v59, %v1803_v39  ;;  %vm3836_vm6 = vcmask 1039360  }
 0x344   :  { %2039 = vmatprep.subr.mxu0 %v1815_v54 }
 0x346   :  { %v1842_v51 = vpop.permute.xlu0 %1841  ;;  %v1879_v58 = vpop.permute.xlu1 %1878 }
 0x347   :  { %v1890_v44 = vsel %vm497_vm4, %v3485_v35, %v1879_v58  ;;  %v1891_v41 = vsel %vm497_vm4, %v1879_v58, %v3620_v11  ;;  %v1853_v35 = vsel %vm454_vm5, %v3497_v23, %v1842_v51 }
 0x348   :  { %2106 = vmatprep.subr.mxu1 %v1891_v41 }
 0x349   :  { %2107 = vmatpush1.msra.mxu1 %v1890_v44 }
 0x34a   :  { %v1762_v24 = vpop.permute.xlu0 %1761  ;;  %v1799_v4 = vpop.permute.xlu1 %1798 }
 0x34b   :  { %v1814_v20 = vsel %vm3825_vm8, %v1799_v4, %v1801_v59  ;;  %v1777_v1 = vsel %vm3827_vm2, %v1762_v24, %v1764_v62  ;;  %vm3837_vm8 = vmmov %vm3828_vm0 }
 0x34c   :  { %2040 = vmatpush1.msra.mxu0 %v1814_v20  ;;  %vm3839_vm2 = vmmov %vm3836_vm6 }
 0x34e   :  { %v1729_v5 = vpop.permute.xlu0 %1728  ;;  %v1766_v63 = vpop.permute.xlu1 %1765 }
 0x34f   :  { %v1778_v34 = vsel %vm3826_vm13, %v1764_v62, %v1766_v63  ;;  %vm3838_vm13 = vmmov %vm3828_vm0 }
 0x350   :  { %2041 = vmatprep.subr.mxu0 %v1778_v34 }
 0x351   :  { %2042 = vmatpush1.msra.mxu0 %v1777_v1 }
 0x352   :  { %v3638_v32 = vpop.permute.xlu0 %1806  ;;  %v3640_v28 = vpop.permute.xlu1 %1843 }
 0x353   :  { %v1854_v55 = vsel %vm454_vm5, %v1842_v51, %v3640_v28 }
 0x354   :  { %2108 = vmatprep.subr.mxu1 %v1854_v55 }
 0x355   :  { %2109 = vmatpush1.msra.mxu1 %v1853_v35 }
 0x356   :  { %v1690_v0 = vpop.permute.xlu0 %1689  ;;  %v1727_v8 = vpop.permute.xlu1 %1726 }
 0x357   :  { %v1741_v42 = vsel %vm3828_vm0, %v1727_v8, %v1729_v5  ;;  %vm3840_vm0 = vmmov %vm3832_vm7 }
 0x358   :  { %2043 = vmatprep.subr.mxu0 %v1741_v42 }
 0x35a   :  { %v1768_v2 = vpop.permute.xlu0 %1767  ;;  %v1805_v31 = vpop.permute.xlu1 %1804 }
 0x35b   :  { %v1816_v10 = vsel %vm3829_vm14, %v1803_v39, %v1805_v31  ;;  %v1817_v22 = vsel %vm3830_vm1, %v1805_v31, %v3638_v32  ;;  %v1779_v60 = vsel %vm3835_vm11, %v1766_v63, %v1768_v2  ;;  %vm3841_vm14 = vmmov %vm3840_vm0 }
 0x35c   :  { %2110 = vmatprep.subr.mxu1 %v1817_v22  ;;  %vm3842_vm1 = vmmov %vm3839_vm2 }
 0x35d   :  { %2111 = vmatpush1.msra.mxu1 %v1816_v10  ;;  %vm3846_vm11 = vmmov %vm3834_vm10 }
 0x35e   :  { %v1688_v27 = vpop.permute.xlu0 %1687  ;;  %v1725_v43 = vpop.permute.xlu1 %1724 }
 0x35f   :  { %v1740_v48 = vsel %vm3831_vm15, %v1725_v43, %v1727_v8  ;;  %v1703_v36 = vsel %vm3833_vm9, %v1688_v27, %v1690_v0  ;;  %vm3843_vm15 = vmmov %vm3842_vm1 }
 0x360   :  { %2044 = vmatpush1.msra.mxu0 %v1740_v48 }
 0x362   :  { %v1655_v14 = vpop.permute.xlu0 %1654  ;;  %v1692_v23 = vpop.permute.xlu1 %1691 }
 0x363   :  { %v1704_v3 = vsel %vm3832_vm7, %v1690_v0, %v1692_v23  ;;  %vm2417_vm7 = vmmov 0  }
 0x364   :  { %2045 = vmatprep.subr.mxu0 %v1704_v3 }
 0x365   :  { %2046 = vmatpush1.msra.mxu0 %v1703_v36 }
 0x366   :  { %v3653_v16 = vpop.permute.xlu0 %1732  ;;  %v3655_v37 = vpop.permute.xlu1 %1769 }
 0x367   :  { %v1780_v19 = vsel %vm3834_vm10, %v1768_v2, %v3655_v37 }
 0x368   :  { %2112 = vmatprep.subr.mxu1 %v1780_v19 }
 0x369   :  { %2113 = vmatpush1.msra.mxu1 %v1779_v60 }
 0x36a   :  { %v1694_v18 = vpop.permute.xlu0 %1693  ;;  %v1653_v17 = vpop.permute.xlu1 %1652 }
 0x36b   :  { %v1667_v26 = vsel %vm3836_vm6, %v1653_v17, %v1655_v14  ;;  %v1705_v7 = vsel %vm3841_vm14, %v1692_v23, %v1694_v18 }
 0x36c   :  { %2047 = vmatprep.subr.mxu0 %v1667_v26 }
 0x36e   :  { %v1657_v49 = vpop.permute.xlu0 %1656  ;;  %v1731_v45 = vpop.permute.xlu1 %1730 }
 0x36f   :  { %v1742_v6 = vsel %vm3837_vm8, %v1729_v5, %v1731_v45  ;;  %v1743_v57 = vsel %vm3838_vm13, %v1731_v45, %v3653_v16  ;;  %vm3851_vm13 = vmmov %vm3840_vm0 }
 0x370   :  { %2114 = vmatprep.subr.mxu1 %v1743_v57 }
 0x371   :  { %2115 = vmatpush1.msra.mxu1 %v1742_v6 }
 0x372   :  { %v1920_v53 = vpop.permute.xlu0 %1919  ;;  %v1651_v40 = vpop.permute.xlu1 %1650 }
 0x373   :  { %v1666_v50 = vsel %vm3839_vm2, %v1651_v40, %v1653_v17  ;;  %v1929_v51 = vsel %vm540_vm3, %v3622_v21, %v1920_v53  ;;  %vm3852_vm2 = vmmov %vm3840_vm0 }
 0x374   :  { %2048 = vmatpush1.msra.mxu0 %v1666_v50 }
 0x375   :  { %2049 = vmatprep.subr.mxu0 %v3448_v9  ;;  %v1668_v9 = vsel %vm3843_vm15, %v1655_v14, %v1657_v49  ;;  %vm3856_vm15 = vmmov %vm3852_vm2 }
 0x376   :  { %v1883_v29 = vpop.permute.xlu0 %1882  ;;  %2050 = vmatpush1.msra.mxu0 %v3446_v15  ;;  %v3672_v56 = vpop.permute.xlu1 %1695 }
 0x377   :  { %2326 = vmatmul.mubr.msk.f32.vlgmr.msra.gmra.mxu0 %vm1289_vm12, %v3668_v61  ;;  %v1706_v52 = vsel %vm3840_vm0, %v1694_v18, %v3672_v56  ;;  %v1892_v21 = vsel %vm497_vm4, %v3620_v11, %v1883_v29  ;;  %vm3853_vm0 = vmmov %vm3842_vm1 }
 0x378   :  { %2116 = vmatprep.subr.mxu1 %v1706_v52  ;;  %2225 = vmatprep.mubr.f32.mxu0 %v2416_v25  ;;  %vm3854_vm14 = vmmov %vm3853_vm0 }
 0x379   :  { %2117 = vmatpush1.msra.mxu1 %v1705_v7 }
 0x37a   :  { %v1846_v39 = vpop.permute.xlu0 %1845  ;;  %v3680_v13 = vpop.permute.xlu1 %1658 }
 0x37b   :  { %v1669_v15 = vsel %vm3842_vm1, %v1657_v49, %v3680_v13  ;;  %v1855_v4 = vsel %vm454_vm5, %v3640_v28, %v1846_v39 }
 0x37c   :  { %2118 = vmatprep.subr.mxu1 %v1669_v15 }
 0x37d   :  { %2119 = vmatpush1.msra.mxu1 %v1668_v9 }
 0x37e   :  { %v1924_v46 = vpop.permute.xlu0 %1923  ;;  %2120 = vmatprep.subr.mxu1 %v3466_v38  ;;  %v1922_v62 = vpop.permute.xlu1 %1921 }
 0x37f   :  { %v1931_v59 = vsel %vm540_vm3, %v1922_v62, %v1924_v46  ;;  %2121 = vmatpush1.msra.mxu1 %v3459_v12  ;;  %v1930_v54 = vsel %vm540_vm3, %v1920_v53, %v1922_v62  ;;  %vm3844_vm3 = vcmask 867328  }
 0x380   :  { %2327 = vmatmul.mubr.msk.f32.vlgmr.msra.gmra.mxu1 %vm1289_vm12, %v3668_v61  ;;  %2175 = vmatprep.subr.mxu0 %v1930_v54  ;;  %vm3845_vm9 = vmmov %vm3844_vm3 }
 0x381   :  { %2340 = vmatprep.subr.mxu1 %v2416_v25  ;;  %2176 = vmatpush1.msra.mxu0 %v1929_v51 }
 0x382   :  { %2341 = vmatpush3.msra.mxu1 %v1931_v59  ;;  %v1811_v58 = vpop.permute.xlu0 %1810  ;;  %v1885_v38 = vpop.permute.xlu1 %1884  ;;  %2358 = vmatprep.mubr.msk.f32.mxu1 %vm2417_vm7, %v2416_v25  ;;  %vm3857_vm7 = vmmov %vm3853_vm0 }
 0x383   :  { %v1893_v12 = vsel %vm497_vm4, %v1883_v29, %v1885_v38  ;;  %2342 = vmatprep.subr.mxu1 %v2416_v25 }
 0x384   :  { %2177 = vmatprep.subr.mxu0 %v1893_v12 }
 0x385   :  { %2178 = vmatpush1.msra.mxu0 %v1892_v21 }
 0x386   :  { %v1772_v44 = vpop.permute.xlu0 %1771  ;;  %v1848_v41 = vpop.permute.xlu1 %1847 }
 0x387   :  { %v1856_v24 = vsel %vm454_vm5, %v1846_v39, %v1848_v41 }
 0x388   :  { %2179 = vmatprep.subr.mxu0 %v1856_v24 }
 0x389   :  { %2180 = vmatpush1.msra.mxu0 %v1855_v4 }
 0x38a   :  { %v1850_v20 = vpop.permute.xlu0 %1849  ;;  %v1809_v5 = vpop.permute.xlu1 %1808 }
 0x38b   :  { %v1818_v63 = vsel %vm3844_vm3, %v3638_v32, %v1809_v5  ;;  %v1819_v34 = vsel %vm3845_vm9, %v1809_v5, %v1811_v58  ;;  %v1857_v35 = vsel %vm454_vm5, %v1848_v41, %v1850_v20  ;;  %v1781_v32 = vsel %vm3846_vm11, %v3655_v37, %v1772_v44  ;;  %vm3849_vm5 = vmmov %vm3844_vm3 }
 0x38c   :  { %2181 = vmatprep.subr.mxu0 %v1819_v34 }
 0x38d   :  { %2182 = vmatpush1.msra.mxu0 %v1818_v63 }
 0x38e   :  { %v1737_v11 = vpop.permute.xlu0 %1736  ;;  %v1887_v1 = vpop.permute.xlu1 %1886 }
 0x38f   :  { %v1894_v55 = vsel %vm497_vm4, %v1885_v38, %v1887_v1  ;;  %vm3847_vm4 = vmmov %vm3837_vm8 }
 0x390   :  { %2343 = vmatpush3.msra.mxu1 %v1894_v55  ;;  %vm3848_vm6 = vmmov %vm3847_vm4 }
 0x391   :  { %2344 = vmatprep.subr.mxu1 %v2416_v25  ;;  %vm3850_vm8 = vmmov %vm3834_vm10 }
 0x392   :  { %2345 = vmatpush3.msra.mxu1 %v1857_v35  ;;  %v1774_v28 = vpop.permute.xlu1 %1773  ;;  %v1698_v8 = vpop.permute.xlu0 %1697  ;;  %vm3855_vm1 = vmmov %vm3847_vm4 }
 0x393   :  { %v1782_v0 = vsel %vm3834_vm10, %v1772_v44, %v1774_v28  ;;  %2346 = vmatprep.subr.mxu1 %v2416_v25  ;;  %v1707_v23 = vsel %vm3852_vm2, %v3672_v56, %v1698_v8 }
 0x394   :  { %2183 = vmatprep.subr.mxu0 %v1782_v0 }
 0x395   :  { %2184 = vmatpush1.msra.mxu0 %v1781_v32 }
 0x396   :  { %v1735_v42 = vpop.permute.xlu1 %1734  ;;  %v1776_v10 = vpop.permute.xlu0 %1775 }
 0x397   :  { %v1744_v2 = vsel %vm3847_vm4, %v3653_v16, %v1735_v42  ;;  %v1745_v31 = vsel %vm3848_vm6, %v1735_v42, %v1737_v11  ;;  %v1783_v43 = vsel %vm3850_vm8, %v1774_v28, %v1776_v10 }
 0x398   :  { %2185 = vmatprep.subr.mxu0 %v1745_v31 }
 0x399   :  { %2186 = vmatpush1.msra.mxu0 %v1744_v2 }
 0x39a   :  { %v1813_v22 = vpop.permute.xlu1 %1812  ;;  %v1663_v3 = vpop.permute.xlu0 %1662 }
 0x39b   :  { %v1820_v27 = vsel %vm3849_vm5, %v1811_v58, %v1813_v22 }
 0x39c   :  { %2347 = vmatpush3.msra.mxu1 %v1820_v27 }
 0x39d   :  { %2348 = vmatprep.subr.mxu1 %v2416_v25 }
 0x39e   :  { %2349 = vmatpush3.msra.mxu1 %v1783_v43  ;;  %v1700_v48 = vpop.permute.xlu1 %1699  ;;  %v1702_v19 = vpop.permute.xlu0 %1701 }
 0x39f   :  { %v1708_v14 = vsel %vm3851_vm13, %v1698_v8, %v1700_v48  ;;  %2350 = vmatprep.subr.mxu1 %v2416_v25  ;;  %v1709_v17 = vsel %vm3856_vm15, %v1700_v48, %v1702_v19 }
 0x3a0   :  { %2187 = vmatprep.subr.mxu0 %v1708_v14 }
 0x3a1   :  { %2188 = vmatpush1.msra.mxu0 %v1707_v23 }
 0x3a2   :  { %v1661_v36 = vpop.permute.xlu1 %1660 }
 0x3a3   :  { %v1670_v16 = vsel %vm3853_vm0, %v3680_v13, %v1661_v36  ;;  %v1671_v37 = vsel %vm3854_vm14, %v1661_v36, %v1663_v3 }
 0x3a4   :  { %2189 = vmatprep.subr.mxu0 %v1671_v37 }
 0x3a5   :  { %2190 = vmatpush1.msra.mxu0 %v1670_v16 }
 0x3a6   :  { %2191 = vmatprep.subr.mxu0 %v3561_v30  ;;  %v1739_v60 = vpop.permute.xlu1 %1738 }
 0x3a7   :  { %v1746_v18 = vsel %vm3855_vm1, %v1737_v11, %v1739_v60  ;;  %2192 = vmatpush1.msra.mxu0 %v3502_v33 }
 0x3a8   :  { %2328 = vmatmul.mubr.msk.f32.vlgmr.msra.gmra.mxu0 %vm1289_vm12, %v3668_v61  ;;  %2351 = vmatpush3.msra.mxu1 %v1746_v18 }
 0x3a9   :  { %2352 = vmatprep.subr.mxu1 %v2416_v25 }
 0x3aa   :  { %2353 = vmatpush3.msra.mxu1 %v1709_v17  ;;  %v1665_v26 = vpop.permute.xlu1 %1664 }
 0x3ab   :  { %v1672_v49 = vsel %vm3857_vm7, %v1663_v3, %v1665_v26  ;;  %2354 = vmatprep.subr.mxu1 %v2416_v25  ;;  %v2014_v30 = vpop.permute.xlu0 %2013 }
 0x3ac   :  { %2355 = vmatpush3.msra.mxu1 %v1672_v49 }
 0x3ad   :  { %2356 = vmatprep.subr.mxu1 %v2416_v25 }
 0x3ae   :  { %2357 = vmatpush3.msra.mxu1 %v3581_v47 }
 0x3af   :  { %2359 = vmatmul.mubr.msk.f32.vlgmr.msra.gmra.mxu1 %vm1289_vm12, %v3668_v61 }
 0x437   :  { %v2085_v33 = vpop.f32.mrf.mxu0 }
 0x438   :  { %v2086_v6 = vadd.f32 %v2085_v33, %v2014_v30 }
 0x439   :  { %v2087_v45 = vpop.f32.mrf.mxu0 }
 0x43a   :  { %v2088_v57 = vadd.f32 %v2087_v45, %v2014_v30 }
 0x43c   :  { %v2308_v53 = vcombine.low %v2086_v6, %v2088_v57 }
 0x43e   :  { %2314 = vst [vmem:[%s3756_s6] sm:$0xff] %v2308_v53 }
 0x440   :  { %v2156_v40 = vpop.f32.mrf.mxu1 }
 0x441   :  { %v2157_v29 = vadd.f32 %v2156_v40, %v2014_v30 }
 0x442   :  { %v2158_v50 = vpop.f32.mrf.mxu1 }
 0x443   :  { %v2159_v56 = vadd.f32 %v2158_v50, %v2014_v30 }
 0x445   :  { %v2309_v25 = vcombine.low %v2157_v29, %v2159_v56 }
 0x447   :  { %2315 = vst [vmem:[%s3756_s6 + $0x8] sm:$0xff] %v2309_v25 }
 0x468   :  { %v2227_v47 = vpop.f32.mrf.mxu0 }
 0x469   :  { %v2228_v52 = vadd.f32 %v2227_v47, %v2014_v30 }
 0x46a   :  { %v2229_v61 = vpop.f32.mrf.mxu0 }
 0x46b   :  { %v2230_v7 = vadd.f32 %v2229_v61, %v2014_v30 }
 0x46d   :  { %v2310_v39 = vcombine.low %v2228_v52, %v2230_v7 }
 0x46f   :  { %2316 = vst [vmem:[%s3756_s6 + $0x10] sm:$0xff] %v2310_v39  ;;  %v2298_v13 = vpop.f32.mrf.mxu1 }
 0x470   :  { %v2299_v15 = vadd.f32 %v2298_v13, %v2014_v30 }
 0x471   :  { %v2360_v9 = vpop.f32.mrf.mxu1 }
 0x472   :  { %2317 = vst [vmem:[%s3756_s6 + $0x18] sm:$0xf] %v2299_v15 }

</bundles_post_ra>
